<compile_context>
chip_gen: v5e
topology: v5e:2x2
jax: 0.10.0
libtpu: 0.0.40
codegen_flags: <defaults>
</compile_context>

<pallas_src>
import jax
import jax.numpy as jnp
from jax.experimental import pallas as pl
from jax.experimental.pallas import tpu as pltpu


def _enti_attn_kernel(x_ref, m1_ref, m2_ref, mcat_ref,
                      w1a_ref, w1b_ref, b1_ref, w2_ref, b2_ref, o_ref):
    x = x_ref[...]                                   # (TB, S, D)  f32 (or bf16)
    TB, S, D = x.shape

    m1 = m1_ref[...]                                 # (TB, S) f32
    m2 = m2_ref[...]                                 # (TB, S) f32

    # batch_entity_hidden with catOverTime 'sum': VPU multiply + sublane reduce
    # (no MXU; degenerate q=1 matmuls would waste the 128/256-wide array).
    e1 = jnp.sum(m1[:, :, None] * x, axis=1)         # (TB, D) f32
    e2 = jnp.sum(m2[:, :, None] * x, axis=1)         # (TB, D) f32

    # Fused bilinear projection for both entities: one dense MXU matmul against
    # the wrapper-built block-diagonal [[M1^T, 0], [0, M2^T]].
    # v1[b,d] = sum_e M1[d,e] * e1[b,e],  v2[b,d] = sum_e M2[d,e] * e2[b,e]
    e_cat = jnp.concatenate([e1, e2], axis=-1)                     # (TB, 2D)
    v_cat = jnp.dot(e_cat, mcat_ref[...],
                    preferred_element_type=jnp.float32)            # (TB, 2D)
    v1 = v_cat[:, :D]
    v2 = v_cat[:, D:]

    def attend(v):
        # score[b, s] = x[b, s, :] . v[b, :]   -> lane-dense (TB, S)
        score = jnp.sum(x * v[:, None, :], axis=-1)                # (TB, S) f32
        # softmax over the sentence axis (F.softmax dim=1 on a 2-D tensor).
        smax = jnp.max(score, axis=-1, keepdims=True)
        e = jnp.exp(score - smax)
        denom = jnp.sum(e, axis=-1, keepdims=True)
        r = pl.reciprocal(denom, approx=True)
        r = r * (2.0 - denom * r)            # one Newton step -> f32 accuracy
        alpha = e * r                        # (TB, S)
        # context[b, d] = sum_s alpha[b, s] * x[b, s, d]
        return jnp.sum(alpha[:, :, None] * x, axis=1)              # (TB, D) f32

    c1 = attend(v1)
    c2 = attend(v2)

    # attn_dropout / fc1_dropout are inference-mode identities.
    # fc1 on concat([c1, c2], -1): W1 is pre-split into its e1/e2 halves so no
    # in-kernel concatenate is needed here.
    h = jnp.dot(c1, w1a_ref[...], preferred_element_type=jnp.float32)
    h = h + jnp.dot(c2, w1b_ref[...], preferred_element_type=jnp.float32)
    h = jnp.maximum(h + b1_ref[...], 0.0)                          # (TB, H)

    logits = jnp.dot(h, w2_ref[...],
                     preferred_element_type=jnp.float32) + b2_ref[...]   # (TB, T)

    # softmax_layer: log_softmax over the target axis (dim=1).
    lmax = jnp.max(logits, axis=-1, keepdims=True)
    z = logits - lmax
    lse = jnp.log(jnp.sum(jnp.exp(z), axis=-1, keepdims=True))
    o_ref[...] = (z - lse).astype(o_ref.dtype)


def _vmem_capacity_bytes():
    """Physical VMEM per TensorCore (v5e/v6e: 128 MiB, v7x: 64 MiB)."""
    try:
        info = pltpu.get_tpu_info()
        cap = int(getattr(info, "vmem_capacity_bytes", 0) or 0)
        if cap > 0:
            return cap
    except Exception:
        pass
    return 64 << 20   # conservative fallback (v7x per-TensorCore VMEM)


def _pick_tile_b(B, row_bytes, budget_bytes, *, min_steps=2, max_tile=1024):
    """Batch rows per grid step.

    Largest multiple-of-8 divisor of B that (a) fits the per-step streaming
    budget (generation-aware: tight on v7x's 64 MiB, large on v5e/v6e's 128 MiB)
    and (b), when B permits, leaves >= min_steps grid steps so the "parallel"
    batch axis can shard across v7x's two TensorCores.
    """
    cap = max(8, budget_bytes // max(row_bytes, 1))
    cap = min(cap, max_tile)
    if B > 8 and min_steps > 1:
        cap = min(cap, max(8, B // min_steps))   # keep >= 2 steps for megacore
    if B <= cap:
        return B
    t = (cap // 8) * 8
    while t >= 8:
        if B % t == 0:
            return t
        t -= 8
    # No multiple-of-8 divisor fits the budget: full-B tile is always layout-legal
    # (block dims equal full array dims) even if it exceeds the soft budget.
    return B


def enti_attn_forward(rnn_out, e1_mask, e2_mask, attn_e1_M, attn_e2_M,
                      fc1_w, fc1_b, out_w, out_b, *, tile_b=None,
                      stream_dtype=None):
    """Post-LSTM forward of entiAttnMatRNN (eval mode, softmax_layer branch).

    rnn_out: (B, S, D); e*_mask: (B, S) per-token counts of entity positions;
    attn_e*_M: (D, D); fc1_w: (H, 2D); fc1_b: (H,); out_w: (T, H); out_b: (T,).
    stream_dtype: optionally stream rnn_out as e.g. jnp.bfloat16 (halves HBM
    traffic on bandwidth-poor v5e); all softmax/accumulation math stays f32.
    """
    B, S, D = rnn_out.shape
    H = fc1_w.shape[0]
    T = out_w.shape[0]
    assert fc1_w.shape == (H, 2 * D) and out_w.shape == (T, H)

    x = rnn_out if stream_dtype is None else rnn_out.astype(stream_dtype)
    xdt = jnp.dtype(x.dtype)

    # Wrapper-side layout plumbing:
    #  * masks stay 2-D (B, S): lane-dense, contiguous DMAs, 8 rows per tile,
    #  * both bilinear matrices fused into one block-diagonal (2D, 2D) operand
    #    (pre-transposed so the kernel does a plain e_cat @ Mcat),
    #  * fc weights pre-transposed to (in, out); fc1 split into its e1/e2 halves.
    m1 = e1_mask.astype(jnp.float32)                           # (B, S)
    m2 = e2_mask.astype(jnp.float32)
    zero = jnp.zeros((D, D), jnp.float32)
    mcat = jnp.block([[attn_e1_M.T.astype(jnp.float32), zero],
                      [zero, attn_e2_M.T.astype(jnp.float32)]])  # (2D, 2D)
    w1a = fc1_w[:, :D].T.astype(jnp.float32)                   # (D, H)
    w1b = fc1_w[:, D:].T.astype(jnp.float32)                   # (D, H)
    b1 = fc1_b.reshape(1, H).astype(jnp.float32)
    w2 = out_w.T.astype(jnp.float32)                           # (H, T)
    b2 = out_b.reshape(1, T).astype(jnp.float32)

    # Generation-aware VMEM budgeting.
    vmem_cap = _vmem_capacity_bytes()
    weight_bytes = sum(int(a.size) * a.dtype.itemsize
                       for a in (mcat, w1a, w1b, b1, w2, b2))
    # Bytes streamed per batch row per step (x tile + two mask tiles). The
    # pipeline double-buffers it and in-kernel intermediates roughly match it
    # again -> budget ~1/4 of usable VMEM for the per-step streamed slab.
    row_bytes = S * D * xdt.itemsize + 2 * S * 4
    stream_budget = max(1 << 20, (int(vmem_cap * 0.8) - weight_bytes) // 4)
    if tile_b is None:
        tile_b = _pick_tile_b(B, row_bytes, stream_budget)
    if B % tile_b != 0 or not (tile_b % 8 == 0 or tile_b == B):
        raise ValueError(f"tile_b={tile_b} must divide B={B} and be a multiple "
                         f"of 8 (or equal B)")
    grid = (B // tile_b,)
    vmem_limit = int(vmem_cap * 0.85)   # raise scoped limit, keep headroom

    vmem = pltpu.MemorySpace.VMEM

    def streamed(shape, imap):
        return pl.BlockSpec(shape, imap, memory_space=vmem)

    def resident(shape):  # weights: same block every grid step -> DMA'd once
        return pl.BlockSpec(shape, lambda i: (0, 0), memory_space=vmem)

    # Advisory cost hint.
    flops = int(B * (12 * S * D + 8 * D * D + 4 * D * H + 2 * H * T
                     + 10 * S + 6 * T))
    transcendentals = int(B * (2 * S + T + 3))
    bytes_accessed = int(x.size * xdt.itemsize + (m1.size + m2.size) * 4
                         + weight_bytes + B * T * 4)

    return pl.pallas_call(
        _enti_attn_kernel,
        out_shape=jax.ShapeDtypeStruct((B, T), jnp.float32),
        grid=grid,
        in_specs=[
            streamed((tile_b, S, D), lambda i: (i, 0, 0)),   # rnn_out tile (streams)
            streamed((tile_b, S), lambda i: (i, 0)),         # e1 mask tile
            streamed((tile_b, S), lambda i: (i, 0)),         # e2 mask tile
            resident((2 * D, 2 * D)),                        # blockdiag [M1^T|M2^T]
            resident((D, H)),                                # fc1 weight, e1 half
            resident((D, H)),                                # fc1 weight, e2 half
            resident((1, H)),                                # fc1 bias
            resident((H, T)),                                # output fc weight
            resident((1, T)),                                # output fc bias
        ],
        out_specs=streamed((tile_b, T), lambda i: (i, 0)),
        compiler_params=pltpu.CompilerParams(
            dimension_semantics=("parallel",),
            vmem_limit_bytes=vmem_limit),
        cost_estimate=pl.CostEstimate(flops=flops,
                                      transcendentals=transcendentals,
                                      bytes_accessed=bytes_accessed),
    )(x, m1, m2, mcat, w1a, w1b, b1, w2, b2)


if __name__ == "__main__":
    jax.config.update("jax_default_matmul_precision", "highest")

    # Small shapes consistent with the module's forward:
    # batch, max_sent_len, rnn_hidden_dim, fc1_hidden_dim, targ_size
    B, S, D, H, T = 16, 16, 32, 32, 8

    key = jax.random.PRNGKey(0)
    (k_rnn, k_i1, k_i2, k_m1, k_m2,
     k_w1, k_b1, k_w2, k_b2) = jax.random.split(key, 9)

    # TODO(synk): word_embeddings + input_dropout + bidirectional nn.LSTM +
    # rnn_dropout run upstream; the sequential LSTM recurrence is not mapped to
    # Pallas here, so the kernel consumes rnn_out (the LSTM output) directly.
    rnn_out = jax.random.normal(k_rnn, (B, S, D), dtype=jnp.float32)

    # Entity token positions (tensor_feats[1]/[2]); batch_entity_hidden with
    # cat 'sum' is expressed as a dense per-token count mask.
    e1_idx = jax.random.randint(k_i1, (B, 2), 0, S)
    e2_idx = jax.random.randint(k_i2, (B, 1), 0, S)
    e1_mask = jnp.sum(jax.nn.one_hot(e1_idx, S, dtype=jnp.float32), axis=1)   # (B, S)
    e2_mask = jnp.sum(jax.nn.one_hot(e2_idx, S, dtype=jnp.float32), axis=1)

    # Parameters (PyTorch init conventions).
    attn_e1_M = jax.random.uniform(k_m1, (D, D), minval=-0.1, maxval=0.1,
                                   dtype=jnp.float32)
    attn_e2_M = jax.random.uniform(k_m2, (D, D), minval=-0.1, maxval=0.1,
                                   dtype=jnp.float32)
    lim1 = 1.0 / (2 * D) ** 0.5
    fc1_w = jax.random.uniform(k_w1, (H, 2 * D), minval=-lim1, maxval=lim1,
                               dtype=jnp.float32)
    fc1_b = jax.random.uniform(k_b1, (H,), minval=-lim1, maxval=lim1,
                               dtype=jnp.float32)
    lim2 = 1.0 / H ** 0.5
    out_w = jax.random.uniform(k_w2, (T, H), minval=-lim2, maxval=lim2,
                               dtype=jnp.float32)
    out_b = jax.random.uniform(k_b2, (T,), minval=-lim2, maxval=lim2,
                               dtype=jnp.float32)
    # TODO(synk): ranking_layer branch (params['ranking_loss']=True) not
    # implemented; this is the softmax_layer (log_softmax) output branch.

    # tile_b is auto-selected (budget-aware, >= 2 grid steps): 8 here -> a
    # multi-step "parallel" grid even at this small batch.
    out = enti_attn_forward(rnn_out, e1_mask, e2_mask, attn_e1_M, attn_e2_M,
                            fc1_w, fc1_b, out_w, out_b)
    out = jax.block_until_ready(out)

    # Pure-JAX reference (same math as entiAttnMatRNN.forward after the LSTM,
    # eval mode).
    e1_h = jnp.einsum('bs,bsd->bd', e1_mask, rnn_out)
    e2_h = jnp.einsum('bs,bsd->bd', e2_mask, rnn_out)
    a1 = jax.nn.softmax(jnp.einsum('bsd,de,be->bs', rnn_out, attn_e1_M, e1_h), axis=1)
    a2 = jax.nn.softmax(jnp.einsum('bsd,de,be->bs', rnn_out, attn_e2_M, e2_h), axis=1)
    c1 = jnp.einsum('bs,bsd->bd', a1, rnn_out)
    c2 = jnp.einsum('bs,bsd->bd', a2, rnn_out)
    attn_cat = jnp.concatenate([c1, c2], axis=1)
    fc1_out = jnp.maximum(attn_cat @ fc1_w.T + fc1_b, 0.0)
    ref = jax.nn.log_softmax(fc1_out @ out_w.T + out_b, axis=1)

    assert out.shape == (B, T)
    max_err = float(jnp.max(jnp.abs(out - ref)))
    assert jnp.allclose(out, ref, atol=1e-4, rtol=1e-4), max_err
    assert jnp.allclose(jnp.sum(jnp.exp(out), axis=1), 1.0, atol=1e-4)

    print("KERNEL_OK")
</pallas_src>

<mosaic_0001>
module attributes {stable_mosaic.version = 11 : i64} {
  func.func @_enti_attn_kernel(%arg0: i32, %arg1: memref<8x16x32xf32, #tpu.memory_space<vmem>>, %arg2: memref<8x16xf32, #tpu.memory_space<vmem>>, %arg3: memref<8x16xf32, #tpu.memory_space<vmem>>, %arg4: memref<64x64xf32, #tpu.memory_space<vmem>>, %arg5: memref<32x32xf32, #tpu.memory_space<vmem>>, %arg6: memref<32x32xf32, #tpu.memory_space<vmem>>, %arg7: memref<1x32xf32, #tpu.memory_space<vmem>>, %arg8: memref<32x8xf32, #tpu.memory_space<vmem>>, %arg9: memref<1x8xf32, #tpu.memory_space<vmem>>, %arg10: memref<8x8xf32, #tpu.memory_space<vmem>>) attributes {dimension_semantics = [#tpu.dimension_semantics<parallel>], iteration_bounds = array<i64: 2>, scalar_prefetch = 0 : i64, scratch_operands = 0 : i64, tpu.core_type = #tpu.core_type<tc>, window_params = [{transform_indices = @transform_0, window_bounds = array<i64: 8, 16, 32>}, {transform_indices = @transform_1, window_bounds = array<i64: 8, 16>}, {transform_indices = @transform_2, window_bounds = array<i64: 8, 16>}, {pipeline_mode = #tpu.pipeline_mode<synchronous>, transform_indices = @transform_3, window_bounds = array<i64: 64, 64>}, {pipeline_mode = #tpu.pipeline_mode<synchronous>, transform_indices = @transform_4, window_bounds = array<i64: 32, 32>}, {pipeline_mode = #tpu.pipeline_mode<synchronous>, transform_indices = @transform_5, window_bounds = array<i64: 32, 32>}, {pipeline_mode = #tpu.pipeline_mode<synchronous>, transform_indices = @transform_6, window_bounds = array<i64: 1, 32>}, {pipeline_mode = #tpu.pipeline_mode<synchronous>, transform_indices = @transform_7, window_bounds = array<i64: 32, 8>}, {pipeline_mode = #tpu.pipeline_mode<synchronous>, transform_indices = @transform_8, window_bounds = array<i64: 1, 8>}, {transform_indices = @transform_9, window_bounds = array<i64: 8, 8>}]} {
    %c0 = arith.constant 0 : index
    %c0_0 = arith.constant 0 : index
    %c0_1 = arith.constant 0 : index
    %0 = vector.load %arg1[%c0, %c0_0, %c0_1] : memref<8x16x32xf32, #tpu.memory_space<vmem>>, vector<8x16x32xf32>
    %c0_2 = arith.constant 0 : index
    %c0_3 = arith.constant 0 : index
    %1 = vector.load %arg2[%c0_2, %c0_3] : memref<8x16xf32, #tpu.memory_space<vmem>>, vector<8x16xf32>
    %c0_4 = arith.constant 0 : index
    %c0_5 = arith.constant 0 : index
    %2 = vector.load %arg3[%c0_4, %c0_5] : memref<8x16xf32, #tpu.memory_space<vmem>>, vector<8x16xf32>
    %3 = vector.shape_cast %1 : vector<8x16xf32> to vector<8x16x1xf32>
    %4 = vector.broadcast %3 : vector<8x16x1xf32> to vector<8x16x32xf32>
    %5 = arith.mulf %4, %0 : vector<8x16x32xf32>
    %cst = arith.constant dense<0.000000e+00> : vector<8x32xf32>
    %6 = vector.multi_reduction <add>, %5, %cst [1] : vector<8x16x32xf32> to vector<8x32xf32>
    %7 = vector.shape_cast %2 : vector<8x16xf32> to vector<8x16x1xf32>
    %8 = vector.broadcast %7 : vector<8x16x1xf32> to vector<8x16x32xf32>
    %9 = arith.mulf %8, %0 : vector<8x16x32xf32>
    %cst_6 = arith.constant dense<0.000000e+00> : vector<8x32xf32>
    %10 = vector.multi_reduction <add>, %9, %cst_6 [1] : vector<8x16x32xf32> to vector<8x32xf32>
    %11 = tpu.concatenate %6, %10 in 1 : vector<8x32xf32>, vector<8x32xf32> -> vector<8x64xf32>
    %c0_7 = arith.constant 0 : index
    %c0_8 = arith.constant 0 : index
    %12 = vector.load %arg4[%c0_7, %c0_8] : memref<64x64xf32, #tpu.memory_space<vmem>>, vector<64x64xf32>
    %cst_9 = arith.constant dense<0.000000e+00> : vector<8x64xf32>
    %13 = tpu.matmul %11, %12, %cst_9 {dimension_numbers = #tpu.dot_dimension_numbers<[1], [0], [0], [1], [0, 0, 1, 1], [], []>, precision = #tpu.contract_precision<fp32>} : vector<8x64xf32>, vector<64x64xf32>, vector<8x64xf32> -> vector<8x64xf32>
    %14 = vector.extract_strided_slice %13 {offsets = [0, 0], sizes = [8, 32], strides = [1, 1]} : vector<8x64xf32> to vector<8x32xf32>
    %15 = vector.extract_strided_slice %13 {offsets = [0, 32], sizes = [8, 32], strides = [1, 1]} : vector<8x64xf32> to vector<8x32xf32>
    %16 = vector.shape_cast %14 : vector<8x32xf32> to vector<8x1x32xf32>
    %17 = vector.broadcast %16 : vector<8x1x32xf32> to vector<8x16x32xf32>
    %18 = arith.mulf %0, %17 : vector<8x16x32xf32>
    %cst_10 = arith.constant dense<0.000000e+00> : vector<8x16xf32>
    %19 = vector.multi_reduction <add>, %18, %cst_10 [2] : vector<8x16x32xf32> to vector<8x16xf32>
    %cst_11 = arith.constant dense<0xFF800000> : vector<8xf32>
    %20 = vector.multi_reduction <maximumf>, %19, %cst_11 [1] : vector<8x16xf32> to vector<8xf32>
    %21 = vector.shape_cast %20 : vector<8xf32> to vector<8x1xf32>
    %22 = vector.broadcast %21 : vector<8x1xf32> to vector<8x16xf32>
    %23 = arith.subf %19, %22 : vector<8x16xf32>
    %24 = math.exp %23 : vector<8x16xf32>
    %cst_12 = arith.constant dense<0.000000e+00> : vector<8xf32>
    %25 = vector.multi_reduction <add>, %24, %cst_12 [1] : vector<8x16xf32> to vector<8xf32>
    %26 = vector.shape_cast %25 : vector<8xf32> to vector<8x1xf32>
    %27 = tpu.reciprocal %26 {approx = true} : vector<8x1xf32> -> vector<8x1xf32>
    %28 = arith.mulf %26, %27 : vector<8x1xf32>
    %cst_13 = arith.constant 2.000000e+00 : f32
    %29 = vector.broadcast %cst_13 : f32 to vector<8x1xf32>
    %30 = arith.subf %29, %28 : vector<8x1xf32>
    %31 = arith.mulf %27, %30 : vector<8x1xf32>
    %32 = vector.broadcast %31 : vector<8x1xf32> to vector<8x16xf32>
    %33 = arith.mulf %24, %32 : vector<8x16xf32>
    %34 = vector.shape_cast %33 : vector<8x16xf32> to vector<8x16x1xf32>
    %35 = vector.broadcast %34 : vector<8x16x1xf32> to vector<8x16x32xf32>
    %36 = arith.mulf %35, %0 : vector<8x16x32xf32>
    %cst_14 = arith.constant dense<0.000000e+00> : vector<8x32xf32>
    %37 = vector.multi_reduction <add>, %36, %cst_14 [1] : vector<8x16x32xf32> to vector<8x32xf32>
    %38 = vector.shape_cast %15 : vector<8x32xf32> to vector<8x1x32xf32>
    %39 = vector.broadcast %38 : vector<8x1x32xf32> to vector<8x16x32xf32>
    %40 = arith.mulf %0, %39 : vector<8x16x32xf32>
    %cst_15 = arith.constant dense<0.000000e+00> : vector<8x16xf32>
    %41 = vector.multi_reduction <add>, %40, %cst_15 [2] : vector<8x16x32xf32> to vector<8x16xf32>
    %cst_16 = arith.constant dense<0xFF800000> : vector<8xf32>
    %42 = vector.multi_reduction <maximumf>, %41, %cst_16 [1] : vector<8x16xf32> to vector<8xf32>
    %43 = vector.shape_cast %42 : vector<8xf32> to vector<8x1xf32>
    %44 = vector.broadcast %43 : vector<8x1xf32> to vector<8x16xf32>
    %45 = arith.subf %41, %44 : vector<8x16xf32>
    %46 = math.exp %45 : vector<8x16xf32>
    %cst_17 = arith.constant dense<0.000000e+00> : vector<8xf32>
    %47 = vector.multi_reduction <add>, %46, %cst_17 [1] : vector<8x16xf32> to vector<8xf32>
    %48 = vector.shape_cast %47 : vector<8xf32> to vector<8x1xf32>
    %49 = tpu.reciprocal %48 {approx = true} : vector<8x1xf32> -> vector<8x1xf32>
    %50 = arith.mulf %48, %49 : vector<8x1xf32>
    %cst_18 = arith.constant 2.000000e+00 : f32
    %51 = vector.broadcast %cst_18 : f32 to vector<8x1xf32>
    %52 = arith.subf %51, %50 : vector<8x1xf32>
    %53 = arith.mulf %49, %52 : vector<8x1xf32>
    %54 = vector.broadcast %53 : vector<8x1xf32> to vector<8x16xf32>
    %55 = arith.mulf %46, %54 : vector<8x16xf32>
    %56 = vector.shape_cast %55 : vector<8x16xf32> to vector<8x16x1xf32>
    %57 = vector.broadcast %56 : vector<8x16x1xf32> to vector<8x16x32xf32>
    %58 = arith.mulf %57, %0 : vector<8x16x32xf32>
    %cst_19 = arith.constant dense<0.000000e+00> : vector<8x32xf32>
    %59 = vector.multi_reduction <add>, %58, %cst_19 [1] : vector<8x16x32xf32> to vector<8x32xf32>
    %c0_20 = arith.constant 0 : index
    %c0_21 = arith.constant 0 : index
    %60 = vector.load %arg5[%c0_20, %c0_21] : memref<32x32xf32, #tpu.memory_space<vmem>>, vector<32x32xf32>
    %cst_22 = arith.constant dense<0.000000e+00> : vector<8x32xf32>
    %61 = tpu.matmul %37, %60, %cst_22 {dimension_numbers = #tpu.dot_dimension_numbers<[1], [0], [0], [1], [0, 0, 1, 1], [], []>, precision = #tpu.contract_precision<fp32>} : vector<8x32xf32>, vector<32x32xf32>, vector<8x32xf32> -> vector<8x32xf32>
    %c0_23 = arith.constant 0 : index
    %c0_24 = arith.constant 0 : index
    %62 = vector.load %arg6[%c0_23, %c0_24] : memref<32x32xf32, #tpu.memory_space<vmem>>, vector<32x32xf32>
    %cst_25 = arith.constant dense<0.000000e+00> : vector<8x32xf32>
    %63 = tpu.matmul %59, %62, %cst_25 {dimension_numbers = #tpu.dot_dimension_numbers<[1], [0], [0], [1], [0, 0, 1, 1], [], []>, precision = #tpu.contract_precision<fp32>} : vector<8x32xf32>, vector<32x32xf32>, vector<8x32xf32> -> vector<8x32xf32>
    %64 = arith.addf %61, %63 : vector<8x32xf32>
    %c0_26 = arith.constant 0 : index
    %c0_27 = arith.constant 0 : index
    %65 = vector.load %arg7[%c0_26, %c0_27] : memref<1x32xf32, #tpu.memory_space<vmem>>, vector<1x32xf32>
    %66 = vector.broadcast %65 : vector<1x32xf32> to vector<8x32xf32>
    %67 = arith.addf %64, %66 : vector<8x32xf32>
    %cst_28 = arith.constant 0.000000e+00 : f32
    %68 = vector.broadcast %cst_28 : f32 to vector<8x32xf32>
    %69 = arith.maximumf %67, %68 : vector<8x32xf32>
    %c0_29 = arith.constant 0 : index
    %c0_30 = arith.constant 0 : index
    %70 = vector.load %arg8[%c0_29, %c0_30] : memref<32x8xf32, #tpu.memory_space<vmem>>, vector<32x8xf32>
    %cst_31 = arith.constant dense<0.000000e+00> : vector<8x8xf32>
    %71 = tpu.matmul %69, %70, %cst_31 {dimension_numbers = #tpu.dot_dimension_numbers<[1], [0], [0], [1], [0, 0, 1, 1], [], []>, precision = #tpu.contract_precision<fp32>} : vector<8x32xf32>, vector<32x8xf32>, vector<8x8xf32> -> vector<8x8xf32>
    %c0_32 = arith.constant 0 : index
    %c0_33 = arith.constant 0 : index
    %72 = vector.load %arg9[%c0_32, %c0_33] : memref<1x8xf32, #tpu.memory_space<vmem>>, vector<1x8xf32>
    %73 = vector.broadcast %72 : vector<1x8xf32> to vector<8x8xf32>
    %74 = arith.addf %71, %73 : vector<8x8xf32>
    %cst_34 = arith.constant dense<0xFF800000> : vector<8xf32>
    %75 = vector.multi_reduction <maximumf>, %74, %cst_34 [1] : vector<8x8xf32> to vector<8xf32>
    %76 = vector.shape_cast %75 : vector<8xf32> to vector<8x1xf32>
    %77 = vector.broadcast %76 : vector<8x1xf32> to vector<8x8xf32>
    %78 = arith.subf %74, %77 : vector<8x8xf32>
    %79 = math.exp %78 : vector<8x8xf32>
    %cst_35 = arith.constant dense<0.000000e+00> : vector<8xf32>
    %80 = vector.multi_reduction <add>, %79, %cst_35 [1] : vector<8x8xf32> to vector<8xf32>
    %81 = vector.shape_cast %80 : vector<8xf32> to vector<8x1xf32>
    %82 = math.log %81 : vector<8x1xf32>
    %83 = vector.broadcast %82 : vector<8x1xf32> to vector<8x8xf32>
    %84 = arith.subf %78, %83 : vector<8x8xf32>
    %c0_36 = arith.constant 0 : index
    %c0_37 = arith.constant 0 : index
    %85 = vector.load %arg10[%c0_36, %c0_37] : memref<8x8xf32, #tpu.memory_space<vmem>>, vector<8x8xf32>
    tpu.vector_store %arg10[%c0_36, %c0_37], %84 {strides = array<i32>} : memref<8x8xf32, #tpu.memory_space<vmem>>, vector<8x8xf32>,
    return
  }
  func.func @transform_0(%arg0: i32) -> (i32, i32, i32) {
    %c0_i32 = arith.constant 0 : i32
    %c0_i32_0 = arith.constant 0 : i32
    %c0_i32_1 = arith.constant 0 : i32
    return %arg0, %c0_i32, %c0_i32_0 : i32, i32, i32
  }
  func.func @transform_1(%arg0: i32) -> (i32, i32) {
    %c0_i32 = arith.constant 0 : i32
    %c0_i32_0 = arith.constant 0 : i32
    return %arg0, %c0_i32 : i32, i32
  }
  func.func @transform_2(%arg0: i32) -> (i32, i32) {
    %c0_i32 = arith.constant 0 : i32
    %c0_i32_0 = arith.constant 0 : i32
    return %arg0, %c0_i32 : i32, i32
  }
  func.func @transform_3(%arg0: i32) -> (i32, i32) {
    %c0_i32 = arith.constant 0 : i32
    %c0_i32_0 = arith.constant 0 : i32
    %c0_i32_1 = arith.constant 0 : i32
    return %c0_i32, %c0_i32_0 : i32, i32
  }
  func.func @transform_4(%arg0: i32) -> (i32, i32) {
    %c0_i32 = arith.constant 0 : i32
    %c0_i32_0 = arith.constant 0 : i32
    %c0_i32_1 = arith.constant 0 : i32
    return %c0_i32, %c0_i32_0 : i32, i32
  }
  func.func @transform_5(%arg0: i32) -> (i32, i32) {
    %c0_i32 = arith.constant 0 : i32
    %c0_i32_0 = arith.constant 0 : i32
    %c0_i32_1 = arith.constant 0 : i32
    return %c0_i32, %c0_i32_0 : i32, i32
  }
  func.func @transform_6(%arg0: i32) -> (i32, i32) {
    %c0_i32 = arith.constant 0 : i32
    %c0_i32_0 = arith.constant 0 : i32
    %c0_i32_1 = arith.constant 0 : i32
    return %c0_i32, %c0_i32_0 : i32, i32
  }
  func.func @transform_7(%arg0: i32) -> (i32, i32) {
    %c0_i32 = arith.constant 0 : i32
    %c0_i32_0 = arith.constant 0 : i32
    %c0_i32_1 = arith.constant 0 : i32
    return %c0_i32, %c0_i32_0 : i32, i32
  }
  func.func @transform_8(%arg0: i32) -> (i32, i32) {
    %c0_i32 = arith.constant 0 : i32
    %c0_i32_0 = arith.constant 0 : i32
    %c0_i32_1 = arith.constant 0 : i32
    return %c0_i32, %c0_i32_0 : i32, i32
  }
  func.func @transform_9(%arg0: i32) -> (i32, i32) {
    %c0_i32 = arith.constant 0 : i32
    %c0_i32_0 = arith.constant 0 : i32
    return %arg0, %c0_i32 : i32, i32
  }
}

</mosaic_0001>

<bundles_post_ra>
// kernel: tpu_custom_call.1
= control target key start
LH: loop header
LB: loop body
LE: loop exit
PB: predicated region body
PF: predicated region fallthrough
CT: control target
= control target key end

     0   :  { %s4597_s0 = inlined_call_operand.hbm [shape: f32[16,16,32], index: 0, kind: input, shape index: {}]   ;;  %s4598_s1 = inlined_call_operand.hbm [shape: f32[16,16], index: 1, kind: input, shape index: {}]   ;;  %s4599_s2 = inlined_call_operand.hbm [shape: f32[16,16], index: 2, kind: input, shape index: {}]   ;;  %s4600_s3 = inlined_call_operand.hbm [shape: f32[64,64], index: 3, kind: input, shape index: {}]   ;;  %s4601_s4 = inlined_call_operand.vmem [shape: f32[32,32], index: 4, kind: input, shape index: {}]   ;;  %s4602_s5 = inlined_call_operand.hbm [shape: f32[32,32], index: 5, kind: input, shape index: {}]   ;;  %s4603_s6 = inlined_call_operand.vmem [shape: f32[1,32], index: 6, kind: input, shape index: {}]   ;;  %s4604_s7 = inlined_call_operand.vmem [shape: f32[32,8], index: 7, kind: input, shape index: {}]   ;;  %s4605_s8 = inlined_call_operand.vmem [shape: f32[1,8], index: 8, kind: input, shape index: {}]   ;;  %s4606_s9 = inlined_call_operand.vmem [shape: f32[16,8], index: 9, kind: output, shape index: {}]  }
   0x1   :  { %4619 = sst [smem:[#allocation17_spill]] %s4598_s1 }
   0x2   :  { %4620 = sst [smem:[#allocation18_spill]] %s4600_s3 }
   0x3   :  { %4621 = sst [smem:[#allocation19_spill]] %s4602_s5 }
   0x4   :  { %4622 = sst [smem:[#allocation20_spill]] %s4606_s9 }
   0x5   :  { %14 = vsyncpa [#allocation3], 0 }
   0x6   :  { %16 = vsyncpa [#allocation3 + $0x1], 0 }
   0x7   :  { %17 = vsyncpa [#allocation5], 0 }
   0x8   :  { %19 = vsyncpa [#allocation5 + $0x1], 0 }
   0x9   :  { %20 = vsyncpa [#allocation8], 0  ;;  %s3394_s30 = smov 0   ;;  %s3396_s10 = smov 0  }
   0xa   :  { %s3398_s11 = smov 0   ;;  %s3400_s12 = smov 0  }
   0xb LB: > { %4623 = sst [smem:[#allocation13_spill]] %s3331_s11  ;;  %s3416_s16 = sadd.s32 4294967295, %s3335_s12   ;;  %s3335_s12 = sphi %s3400_s12, %s4642_s12   ;;  %s3331_s11 = sphi %s3398_s11, %s4644_s11   ;;  %s3327_s10 = sphi %s3396_s10, %s4646_s10   ;;  %s3323_s30 = sphi %s3394_s30, %s4645_s30  }
   0xc   : > { %s4624_s3 = sld [smem:[#allocation18_spill]]  ;;  %p2934_p0 = scmp.ge.s32.totalorder %s3335_s12, 1 }
   0xd   : > { %p47_p1 = scmp.eq.s32.totalorder %s3416_s16, 0  ;;  %p261_p2 = scmp.lt.s32.totalorder %s3335_s12, 3 }
   0xe   : > { %s3337_s18 = smov [#allocation7]   ;;  %s4607_s21 = smov 128  }
   0xf   : > { %p3421_p3 = pnand %p2934_p0, %p261_p2  ;;  %s274_s19 = sshll.u32 %s3337_s18, 4  ;;  %s275_s19 = int_to_ptr.vmem [resolvable:$true] %s274_s19 }
  0x10   : > { %s4609_s22 = smov 8   ;;  %s3439_s23 = sadd.s32 1, %s3335_s12  }
  0x11   : > { %p2971_p4 = pneg %p3421_p3  ;;  %4627 = sst [smem:[#allocation14_spill]] %s3439_s23 }
  0x12   : > { %s272_s15 = sshll.u32 %s4624_s3, 4  ;;  %s30_s24 = ssub.s32 %s3335_s12, %s3439_s23  ;;  %s273_s15 = int_to_ptr.hbm [resolvable:$true] %s272_s15 }
  0x13   : > { %p3429_p5 = pnand %p2971_p4, %p47_p1  ;;  %s33_s25 = sadd.s32 1, %s3331_s11 }
  0x14   : > { %p31_p6 = scmp.eq.s32.totalorder %s30_s24, 0  ;;  %p40_p7 = scmp.ne.s32.totalorder %s3331_s11, %s3327_s10 }
  0x15   : > { %2974 = dma.hbm_to_vmem [thread:$0]  (!%p3429_p5), %s273_s15, 1024, %s275_s19, [#allocation8], %s4607_s21, %s4607_s21, %s4609_s22  }
  0x16   : > { %p41_p8 = scmp.eq.s32.totalorder %s3335_s12, 0  ;;  %p46_p9 = scmp.ne.s32.totalorder %s3327_s10, %s3323_s30 }
  0x17   : > { %s3449_s26 = scalar_select %p31_p6, %s3331_s11, %s33_s25  }
  0x18   : > { %p42_p10 = por %p41_p8, %p40_p7  ;;  %p3453_p11 = por %p47_p1, %p46_p9 }
  0x19   : > { %4628 = sst [smem:[#allocation15_spill]] %s3449_s26  ;;  %p2990_p12 = scmp.lt.s32.totalorder %s3335_s12, 2 }
  0x1a   : > { %s3459_s28 = sand.u32 1, %s3331_s11   ;;  %s337_s29 = sand.u32 1, %s3335_s12  }
  0x1b   : > { %s4611_s13 = sshll.u32 %s3459_s28, 3  ;;  %p3463_p13 = pnand %p2990_p12, %p42_p10 }
  0x1c   : > { %s2943_s30 = sshll.u32 %s3335_s12, 3  ;;  %s4631_s1 = sld [smem:[#allocation17_spill]] }
  0x1d   : > { %s341_s25 = scalar_lea.vmem [#allocation4], %s4611_s13  ;;  %s3473_s22 = scalar_lea.sflag [#allocation5], %s337_s29 }
  0x1e   : > { %s349_s21 = sshll.u32 %s341_s25, 4  ;;  %p3177_p2 = pneg %p3463_p13  ;;  %s350_s21 = int_to_ptr.vmem [resolvable:$true] %s349_s21 }
  0x22   : > { %s345_s19 = scalar_lea.hbm %s4631_s1, %s2943_s30 }
  0x23   : > { %s347_s24 = sshll.u32 %s345_s19, 4  ;;  %s3180_s19 = scalar_lea.hbm %s4631_s1, 16  ;;  %s348_s24 = int_to_ptr.hbm [resolvable:$true] %s347_s24 }
  0x24   : > { %s3173_s3 = sshra.s32 %s348_s24, 4  ;;  %s3174_s3 = int_to_ptr.hbm [resolvable:$true] %s3173_s3 }
  0x25   : > { %s3175_s26 = scalar_lea.hbm %s3174_s3, 8  ;;  %p3181_p7 = scmp.lt.s32.totalorder %s3174_s3, %s4631_s1 }
  0x26   : > { %p3176_p0 = scmp.ne.s32.totalorder %s3174_s3, %s3175_s26  ;;  %p3182_p8 = scmp.lt.s32.totalorder %s3180_s19, %s3175_s26 }
  0x28   : > { %p3178_p4 = pnand %p3177_p2, %p3176_p0  ;;  %p3183_p9 = por %p3182_p8, %p3181_p7 }
  0x2a   : > { %p3179_p6 = pneg %p3178_p4 }
  0x2c   : > { %p3184_p10 = pnand %p3183_p9, %p3179_p6 }
  0x2e   : > { %3187 = shalt.err (!%p3184_p10)
}
  0x2f   : > { %2984 = dma.hbm_to_vmem [thread:$0]  (!%p3463_p13), %s348_s24, 128, %s350_s21, %s3473_s22  }
  0x30   : > { %s3492_s15 = scalar_lea.hbm %s4599_s2, %s2943_s30  ;;  %s4632_s5 = sld [smem:[#allocation19_spill]] }
  0x31   : > { %s3340_s26 = smov [#allocation9]   ;;  %s4633_s25 = smov 8  }
  0x32   : > { %s291_s19 = sshll.u32 %s3340_s26, 4  ;;  %s4634_s1 = smov 128   ;;  %s292_s19 = int_to_ptr.vmem [resolvable:$true] %s291_s19 }
  0x33   : > { %s2938_s21 = sshll.u32 %s3459_s28, 7  ;;  %s2956_s24 = sshll.u32 %s3335_s12, 7 }
  0x34   : > { %s324_s30 = scalar_lea.hbm %s4597_s0, %s2956_s24  ;;  %s318_s9 = scalar_lea.vmem [#allocation2], %s2938_s21 }
  0x35   : > { %s325_s23 = sshll.u32 %s324_s30, 4  ;;  %s327_s18 = sshll.u32 %s318_s9, 4  ;;  %s326_s23 = int_to_ptr.hbm [resolvable:$true] %s325_s23  ;;  %s328_s18 = int_to_ptr.vmem [resolvable:$true] %s327_s18 }
  0x36   : > { %s289_s3 = sshll.u32 %s4632_s5, 4  ;;  %s315_s13 = scalar_lea.sflag [#allocation3], %s3459_s28  ;;  %s290_s3 = int_to_ptr.hbm [resolvable:$true] %s289_s3 }
  0x37   : > { %2977 = dma.hbm_to_vmem [thread:$0]  (!%p3429_p5), %s290_s3, 512, %s292_s19, [#allocation8], %s4634_s1, %s4634_s1, %s4633_s25  }
  0x38   : > { %s3233_s26 = sshra.s32 %s326_s23, 4  ;;  %s3240_s3 = scalar_lea.hbm %s4597_s0, 256  ;;  %s3234_s26 = int_to_ptr.hbm [resolvable:$true] %s3233_s26 }
  0x39   : > { %s3235_s5 = scalar_lea.hbm %s3234_s26, 128  ;;  %p3241_p4 = scmp.lt.s32.totalorder %s3234_s26, %s4597_s0 }
  0x3a   : > { %p3236_p12 = scmp.ne.s32.totalorder %s3234_s26, %s3235_s5  ;;  %p3242_p6 = scmp.lt.s32.totalorder %s3240_s3, %s3235_s5 }
  0x3c   : > { %p3238_p0 = pnand %p3236_p12, %p3177_p2  ;;  %p3243_p7 = por %p3242_p6, %p3241_p4 }
  0x3e   : > { %p3239_p5 = pneg %p3238_p0 }
  0x40   : > { %p3244_p8 = pnand %p3243_p7, %p3239_p5 }
  0x42   : > { %3247 = shalt.err (!%p3244_p8)
}
  0x43   : > { %2981 = dma.hbm_to_vmem [thread:$0]  (!%p3463_p13), %s326_s23, 2048, %s328_s18, %s315_s13, %s4634_s1, %s4634_s1, %s4633_s25  }
  0x44   : > { %s366_s9 = sshll.u32 %s3492_s15, 4  ;;  %s4635_s21 = sshll.u32 %s3459_s28, 3  ;;  %s367_s9 = int_to_ptr.hbm [resolvable:$true] %s366_s9 }
  0x45   : > { %s360_s11 = scalar_lea.vmem [#allocation6], %s4635_s21  ;;  %s3263_s30 = sshra.s32 %s367_s9, 4  ;;  %s3264_s30 = int_to_ptr.hbm [resolvable:$true] %s3263_s30 }
  0x46   : > { %s368_s29 = sshll.u32 %s360_s11, 4  ;;  %s3265_s5 = scalar_lea.hbm %s3264_s30, 8  ;;  %s369_s29 = int_to_ptr.vmem [resolvable:$true] %s368_s29 }
  0x47   : > { %p3266_p9 = scmp.ne.s32.totalorder %s3264_s30, %s3265_s5  ;;  %s3270_s12 = scalar_lea.hbm %s4599_s2, 16 }
  0x48   : > { %p3271_p0 = scmp.lt.s32.totalorder %s3264_s30, %s4599_s2  ;;  %p3272_p5 = scmp.lt.s32.totalorder %s3270_s12, %s3265_s5 }
  0x49   : > { %p3268_p10 = pnand %p3266_p9, %p3177_p2 }
  0x4a   : > { %p3273_p4 = por %p3272_p5, %p3271_p0 }
  0x4b   : > { %p3269_p12 = pneg %p3268_p10 }
  0x4d   : > { %p3274_p6 = pnand %p3273_p4, %p3269_p12 }
  0x4f   : > { %3277 = shalt.err (!%p3274_p6)
}
  0x50   : > { %2987 = dma.hbm_to_vmem [thread:$0]  (!%p3463_p13), %s367_s9, 128, %s369_s29, %s3473_s22  }
  0x51   : > { %377 = sbr.rel (%p3421_p3) target bundleno = 2030 (0x7ee), region = 56 }
  0x56   : > { %s379_s23 = sand.u32 1, %s3327_s10  }
  0x57   : > { %s2947_s28 = sshll.u32 %s379_s23, 7  ;;  %s380_s15 = scalar_lea.sflag [#allocation3], %s379_s23 }
  0x58   : > { %s3540_s25 = scalar_lea.vmem [#allocation2], %s2947_s28 }
  0x59   : > { %3310 = dma.done.wait (%p3453_p11), %s380_s15, 2048  }
  0x5a   : > { %3312 = vsyncadd (%p3453_p11), %s380_s15, 4294965248  ;;  %s389_s14 = sand.u32 1, %s3416_s16   ;;  %s2948_s18 = sshll.u32 %s379_s23, 3 }
  0x5b   : > { %s390_s22 = scalar_lea.sflag [#allocation5], %s389_s14  ;;  %s3547_s13 = scalar_lea.vmem [#allocation4], %s2948_s18 }
  0x5c   : > { %3314 = dma.done.wait (%p3453_p11), %s390_s22, 256  }
  0x5d   : > { %3316 = vsyncadd (%p3453_p11), %s390_s22, 4294967040  ;;  %s403_s17 = scalar_lea.vmem [#allocation6], %s2948_s18 }
  0x5e   : > { %3318 = dma.done.wait (%p47_p1), [#allocation8], 1536  }
  0x5f   : > { %3320 = vsyncadd (%p47_p1), [#allocation8], 4294965760  ;;  %v4615_v0 = vlaneseq  ;;  %v480_v2 = vld [vmem:[%s403_s17] sm:$0xff]  ;;  %v479_v10 = vld [vmem:[%s3547_s13] sm:$0xff]  ;;  %vm601_vm0 = vcmask 261120   ;;  %vm874_vm1 = vcmask 1041409  }
  0x60   : > { %v700_v3 = vperm.slane %v480_v2, 2  ;;  %v687_v4 = vperm.slane %v480_v2, 1  ;;  %v674_v5 = vperm.slane %v480_v2, 0  ;;  %v726_v7 = vperm.slane %v480_v2, 4  ;;  %v3573_v29 = vld [vmem:[%s3540_s25] sm:$0xff]  ;;  %v3576_v31 = vld [vmem:[%s3540_s25 + $0x8] sm:$0xff] }
  0x61   : > { %v3558_v1 = vshrl.u32 %v4615_v0, 7  ;;  %v713_v8 = vperm.slane %v480_v2, 3  ;;  %v752_v9 = vperm.slane %v480_v2, 6  ;;  %v739_v11 = vperm.slane %v480_v2, 5  ;;  %v3579_v32 = vld [vmem:[%s3540_s25 + $0x18] sm:$0xff]  ;;  %v3584_v36 = vld [vmem:[%s3540_s25 + $0x10] sm:$0xff] }
  0x62   : > { %v520_v12 = vperm.slane %v479_v10, 3  ;;  %v494_v13 = vperm.slane %v479_v10, 1  ;;  %v765_v14 = vperm.slane %v480_v2, 7  ;;  %v481_v15 = vperm.slane %v479_v10, 0  ;;  %v3587_v37 = vld [vmem:[%s3540_s25 + $0x30] sm:$0xff]  ;;  %v3590_v38 = vld [vmem:[%s3540_s25 + $0x20] sm:$0xff] }
  0x63   : > { %3034 = vset.pattern.permute.xlu2 %v3558_v1  ;;  %3033 = vset.pattern.permute.xlu1 %v3558_v1  ;;  %v490_v6 = vadd.s32 8, %v3558_v1  ;;  %v507_v16 = vperm.slane %v479_v10, 2  ;;  %v533_v17 = vperm.slane %v479_v10, 4  ;;  %v559_v18 = vperm.slane %v479_v10, 6  ;;  %v3593_v39 = vld [vmem:[%s3540_s25 + $0x28] sm:$0xff]  ;;  %v3600_v42 = vld [vmem:[%s3540_s25 + $0x38] sm:$0xff] }
  0x64   : > { %3032 = vset.pattern.permute.xlu0 %v3558_v1  ;;  %v546_v19 = vperm.slane %v479_v10, 5  ;;  %v572_v21 = vperm.slane %v479_v10, 7  ;;  %v3597_v41 = vld [vmem:[%s3540_s25 + $0x48] sm:$0xff]  ;;  %v3605_v46 = vld [vmem:[%s3540_s25 + $0x40] sm:$0xff]  ;;  %v3616_v56 = vld [vmem:[%s3540_s25 + $0x50] sm:$0xff]  ;;  %vm876_vm2 = vcmask 1042434  }
  0x65   : > { %v3619_v57 = vld [vmem:[%s3540_s25 + $0x60] sm:$0xff]  ;;  %v3624_v61 = vld [vmem:[%s3540_s25 + $0x68] sm:$0xff]  ;;  %vm878_vm3 = vcmask 1043459   ;;  %vm880_vm4 = vcmask 1044484   ;;  %vm882_vm5 = vcmask 1045509   ;;  %vm884_vm6 = vcmask 1046534  }
  0x66   : > { %vm886_vm7 = vcmask 1047559   ;;  %s3341_s27 = smov 32   ;;  %vm916_vm8 = vcmask 523264   ;;  %s3342_s19 = smov 96   ;;  %vm1266_vm9 = vcmask 130112   ;;  %vm1297_vm10 = vcmask 130048  }
  0x67   : > { %vm2792_vm11 = vcmask 64512   ;;  %p459_p1 = scmp.lt.s32.totalorder %s3416_s16, 1  ;;  %s4641_s24 = sld [smem:[#allocation20_spill]] }
  0x69   : > { %s4648_s16 = smov (!%p459_p1, %s3416_s16), 1 }
  0x6a   : > { %s2952_s17 = sshll.u32 %s4648_s16, 3 }
  0x6b   : > { %705 = vperm.xlu2 %3034, %v700_v3   ;;  %692 = vperm.xlu1 %3033, %v687_v4  }
  0x6c   : > { %679 = vperm.xlu0 %3032, %v674_v5  }
  0x6d   : > { %s462_s9 = scalar_lea.vmem %s4641_s24, %s2952_s17 }
  0x73   : > { %3037 = vset.pattern.permute.xlu2 %v490_v6  ;;  %3035 = vset.pattern.permute.xlu1 %v490_v6 }
  0x74   : > { %731 = vperm.xlu0 %3032, %v726_v7  }
  0x7b   : > { %711 = vperm.xlu2 %3037, %v700_v3   ;;  %698 = vperm.xlu1 %3035, %v687_v4   ;;  %v3630_v4 = vld [vmem:[%s3540_s25 + $0x58] sm:$0xff] }
  0x7c   : > { %3038 = vset.pattern.permute.xlu0 %v490_v6 }
  0x83   : > { %724 = vperm.xlu2 %3037, %v713_v8   ;;  %3036 = vset.pattern.permute.xlu1 %v3558_v1 }
  0x84   : > { %685 = vperm.xlu0 %3038, %v674_v5  }
  0x8b   : > { %3040 = vset.pattern.permute.xlu2 %v3558_v1  ;;  %718 = vperm.xlu1 %3036, %v713_v8  }
  0x8c   : > { %763 = vperm.xlu0 %3038, %v752_v9  }
  0x93   : > { %744 = vperm.xlu2 %3040, %v739_v11   ;;  %3039 = vset.pattern.permute.xlu1 %v490_v6 }
  0x94   : > { %531 = vperm.xlu0 %3038, %v520_v12  }
  0x9b   : > { %757 = vperm.xlu2 %3040, %v752_v9   ;;  %737 = vperm.xlu1 %3039, %v726_v7  }
  0x9c   : > { %3045 = vset.pattern.permute.xlu0 %v3558_v1 }
  0xa3   : > { %3042 = vset.pattern.permute.xlu2 %v490_v6  ;;  %750 = vperm.xlu1 %3039, %v739_v11  }
  0xa4   : > { %499 = vperm.xlu0 %3045, %v494_v13  }
  0xab   : > { %776 = vperm.xlu2 %3042, %v765_v14   ;;  %3041 = vset.pattern.permute.xlu1 %v3558_v1 }
  0xac   : > { %564 = vperm.xlu0 %3045, %v559_v18  }
  0xb3   : > { %770 = vperm.xlu1 %3041, %v765_v14   ;;  %492 = vperm.xlu2 %3042, %v481_v15  }
  0xbb   : > { %3044 = vset.pattern.permute.xlu2 %v3558_v1  ;;  %486 = vperm.xlu1 %3041, %v481_v15  }
  0xc3   : > { %512 = vperm.xlu2 %3044, %v507_v16   ;;  %3043 = vset.pattern.permute.xlu1 %v490_v6 }
  0xc5   : > { %v706_v20 = vpop.permute.xlu2 %705 }
  0xc6   : > { %v782_v49 = vmul.f32 %v706_v20, %v3590_v38 }
  0xc8   : > { %v812_v62 = vsel %vm601_vm0, %v782_v49, 0.0 }
  0xcb   : > { %525 = vperm.xlu2 %3044, %v520_v12   ;;  %505 = vperm.xlu1 %3043, %v494_v13  }
  0xd3   : > { %518 = vperm.xlu1 %3043, %v507_v16   ;;  %3047 = vset.pattern.permute.xlu2 %v490_v6 }
  0xd5   : > { %v712_v24 = vpop.permute.xlu2 %711 }
  0xd6   : > { %v783_v50 = vmul.f32 %v712_v24, %v3593_v39 }
  0xd8   : > { %v813_v63 = vsel %vm601_vm0, %v783_v50, 0.0 }
  0xd9   : > { %v814_v13 = vadd.f32 %v813_v63, %v812_v62 }
  0xdb   : > { %3046 = vset.pattern.permute.xlu1 %v3558_v1  ;;  %544 = vperm.xlu2 %3047, %v533_v17   ;;  %v815_v24 = vrot.slane %v814_v13, 4 }
  0xdd   : > { %v693_v23 = vpop.permute.xlu1 %692  ;;  %v725_v27 = vpop.permute.xlu2 %724 }
  0xde   : > { %v680_v22 = vpop.permute.xlu0 %679  ;;  %v780_v44 = vmul.f32 %v693_v23, %v3584_v36  ;;  %v785_v53 = vmul.f32 %v725_v27, %v3600_v42 }
  0xdf   : > { %v778_v34 = vmul.f32 %v680_v22, %v3573_v29 }
  0xe0   : > { %v803_v58 = vsel %vm601_vm0, %v780_v44, 0.0  ;;  %v822_v5 = vsel %vm601_vm0, %v785_v53, 0.0 }
  0xe1   : > { %v794_v45 = vsel %vm601_vm0, %v778_v34, 0.0  ;;  %v816_v34 = vadd.f32 %v815_v24, %v814_v13 }
  0xe3   : > { %538 = vperm.xlu1 %3046, %v533_v17   ;;  %557 = vperm.xlu2 %3047, %v546_v19   ;;  %v817_v50 = vrot.slane %v816_v34, 2 }
  0xe5   : > { %v818_v63 = vadd.f32 %v817_v50, %v816_v34 }
  0xe6   : > { %v732_v26 = vpop.permute.xlu0 %731 }
  0xe7   : > { %v786_v54 = vmul.f32 %v732_v26, %v3605_v46 }
  0xe9   : > { %v830_v8 = vsel %vm601_vm0, %v786_v54, 0.0 }
  0xeb   : > { %551 = vperm.xlu1 %3046, %v546_v19   ;;  %3049 = vset.pattern.permute.xlu2 %v3558_v1 }
  0xed   : > { %v699_v25 = vpop.permute.xlu1 %698  ;;  %v745_v33 = vpop.permute.xlu2 %744 }
  0xee   : > { %v781_v40 = vmul.f32 %v699_v25, %v3579_v32 }
  0xf0   : > { %v804_v52 = vsel %vm601_vm0, %v781_v40, 0.0 }
  0xf1   : > { %v805_v1 = vadd.f32 %v804_v52, %v803_v58 }
  0xf3   : > { %3048 = vset.pattern.permute.xlu1 %v490_v6  ;;  %577 = vperm.xlu2 %3049, %v572_v21   ;;  %v788_v6 = vmul.f32 %v745_v33, %v3616_v56  ;;  %v806_v16 = vrot.slane %v805_v1, 4 }
  0xf5   : > { %v758_v2 = vpop.permute.xlu2 %757  ;;  %v839_v17 = vsel %vm601_vm0, %v788_v6, 0.0  ;;  %v807_v26 = vadd.f32 %v806_v16, %v805_v1 }
  0xf6   : > { %v686_v30 = vpop.permute.xlu0 %685  ;;  %v790_v7 = vmul.f32 %v758_v2, %v3619_v57 }
  0xf7   : > { %v779_v35 = vmul.f32 %v686_v30, %v3576_v31  ;;  %v808_v40 = vrot.slane %v807_v26, 2 }
  0xf9   : > { %v795_v47 = vsel %vm601_vm0, %v779_v35, 0.0  ;;  %v809_v53 = vadd.f32 %v808_v40, %v807_v26 }
  0xfa   : > { %v796_v55 = vadd.f32 %v795_v47, %v794_v45 }
  0xfb   : > { %570 = vperm.xlu1 %3048, %v559_v18   ;;  %v848_v18 = vsel %vm601_vm0, %v790_v7, 0.0 }
  0xfc   : > { %v797_v9 = vrot.slane %v796_v55, 4 }
  0xfd   : > { %v719_v28 = vpop.permute.xlu1 %718 }
  0xfe   : > { %v784_v48 = vmul.f32 %v719_v28, %v3587_v37  ;;  %v764_v60 = vpop.permute.xlu0 %763  ;;  %v798_v20 = vadd.f32 %v797_v9, %v796_v55  ;;  %v3647_v55 = vld [vmem:[%s3540_s25 + $0x70] sm:$0xff] }
  0xff   : > { %v791_v11 = vmul.f32 %v764_v60, %v3624_v61 }
 0x100   : > { %v821_v59 = vsel %vm601_vm0, %v784_v48, 0.0  ;;  %v799_v30 = vrot.slane %v798_v20, 2 }
 0x101   : > { %v823_v10 = vadd.f32 %v822_v5, %v821_v59  ;;  %v849_v22 = vsel %vm601_vm0, %v791_v11, 0.0  ;;  %v810_v5 = vrot.slane %v809_v53, 1 }
 0x102   : > { %v850_v28 = vadd.f32 %v849_v22, %v848_v18  ;;  %v800_v47 = vadd.f32 %v799_v30, %v798_v20 }
 0x103   : > { %583 = vperm.xlu1 %3048, %v572_v21   ;;  %v824_v21 = vrot.slane %v823_v10, 4 }
 0x104   : > { %v851_v45 = vrot.slane %v850_v28, 4  ;;  %v801_v59 = vrot.slane %v800_v47, 1 }
 0x105   : > { %v825_v33 = vadd.f32 %v824_v21, %v823_v10  ;;  %v777_v49 = vpop.permute.xlu2 %776 }
 0x106   : > { %v852_v58 = vadd.f32 %v851_v45, %v850_v28  ;;  %v802_v9 = vadd.f32 %v801_v59, %v800_v47 }
 0x107   : > { %v826_v48 = vrot.slane %v825_v33, 2 }
 0x108   : > { %v853_v7 = vrot.slane %v852_v58, 2 }
 0x109   : > { %v827_v60 = vadd.f32 %v826_v48, %v825_v33 }
 0x10b   : > { %v828_v10 = vrot.slane %v827_v60, 1 }
 0x10d   : > { %v738_v43 = vpop.permute.xlu1 %737  ;;  %v3659_v47 = vpop.permute.xlu2 %492 }
 0x10e   : > { %v787_v51 = vmul.f32 %v738_v43, %v3597_v41  ;;  %v3643_v43 = vld [vmem:[%s3540_s25 + $0x78] sm:$0xff] }
 0x110   : > { %v831_v3 = vsel %vm601_vm0, %v787_v51, 0.0  ;;  %v793_v51 = vmul.f32 %v777_v49, %v3643_v43 }
 0x111   : > { %v832_v14 = vadd.f32 %v831_v3, %v830_v8 }
 0x112   : > { %v858_v1 = vsel %vm601_vm0, %v793_v51, 0.0 }
 0x113   : > { %v833_v25 = vrot.slane %v832_v14, 4 }
 0x115   : > { %v751_v12 = vpop.permute.xlu1 %750  ;;  %v834_v35 = vadd.f32 %v833_v25, %v832_v14  ;;  %v811_v14 = vadd.f32 %v810_v5, %v809_v53  ;;  %v915_v53 = vld [vmem:[#allocation7 + $0x38] sm:$0xff] }
 0x116   : > { %v789_v15 = vmul.f32 %v751_v12, %v3630_v4  ;;  %v819_v12 = vrot.slane %v818_v63, 1 }
 0x117   : > { %v835_v52 = vrot.slane %v834_v35, 2  ;;  %v897_v18 = vsel %vm874_vm1, %v811_v14, %v802_v9 }
 0x118   : > { %v840_v19 = vsel %vm601_vm0, %v789_v15, 0.0  ;;  %v820_v21 = vadd.f32 %v819_v12, %v818_v63  ;;  %v911_v12 = vld [vmem:[#allocation7 + $0x18] sm:$0xff] }
 0x119   : > { %v841_v23 = vadd.f32 %v840_v19, %v839_v17  ;;  %v836_v2 = vadd.f32 %v835_v52, %v834_v35  ;;  %v854_v17 = vadd.f32 %v853_v7, %v852_v58  ;;  %v829_v19 = vadd.f32 %v828_v10, %v827_v60  ;;  %v914_v58 = vld [vmem:[#allocation7 + $0x30] sm:$0xff]  ;;  %v912_v7 = vld [vmem:[#allocation7 + $0x20] sm:$0xff] }
 0x11a   : > { %v898_v26 = vsel %vm876_vm2, %v820_v21, %v897_v18  ;;  %v3674_v60 = vand.u32 4294901760, %v914_v58  ;;  %v910_v18 = vld [vmem:[#allocation7 + $0x10] sm:$0xff] }
 0x11b   : > { %v842_v27 = vrot.slane %v841_v23, 4  ;;  %v837_v13 = vrot.slane %v836_v2, 1  ;;  %v855_v25 = vrot.slane %v854_v17, 1  ;;  %v899_v28 = vsel %vm878_vm3, %v829_v19, %v898_v26  ;;  %v908_v26 = vld [vmem:[#allocation7] sm:$0xff] }
 0x11c   : > { %v3720_v21 = vand.u32 4294901760, %v910_v18 }
 0x11d   : > { %v843_v44 = vadd.f32 %v842_v27, %v841_v23  ;;  %v838_v22 = vadd.f32 %v837_v13, %v836_v2  ;;  %v856_v35 = vadd.f32 %v855_v25, %v854_v17  ;;  %v513_v50 = vpop.permute.xlu2 %512  ;;  %v3713_v17 = vand.u32 4294901760, %v911_v12  ;;  %v909_v25 = vld [vmem:[#allocation7 + $0x8] sm:$0xff] }
 0x11f   : > { %v844_v54 = vrot.slane %v843_v44, 2  ;;  %v900_v30 = vsel %vm880_vm4, %v838_v22, %v899_v28  ;;  %v3729_v28 = vsub.f32 %v910_v18, %v3720_v21 }
 0x121   : > { %v845_v6 = vadd.f32 %v844_v54, %v843_v44  ;;  %v3669_v54 = vand.u32 4294901760, %v915_v53 }
 0x123   : > { %v846_v15 = vrot.slane %v845_v6, 1  ;;  %v3672_v59 = vsub.f32 %v915_v53, %v3669_v54  ;;  %929 = vmatpush.msra.mxu0 %v3669_v54  ;;  %1061 = vmatpush.msra.mxu3 %v3669_v54 }
 0x125   : > { %v771_v62 = vpop.permute.xlu1 %770  ;;  %v847_v23 = vadd.f32 %v846_v15, %v845_v6  ;;  %v3667_v52 = vpop.permute.xlu2 %525  ;;  %v963_v2 = vand.u32 4294901760, %v3672_v59  ;;  %1024 = vmatpush.msra.mxu2 %v3672_v59  ;;  %931 = vmatpush.msra.mxu0 %v3674_v60 }
 0x126   : > { %v792_v3 = vmul.f32 %v771_v62, %v3647_v55  ;;  %v3678_v62 = vpop.permute.xlu0 %531  ;;  %1063 = vmatpush.msra.mxu3 %v3674_v60 }
 0x127   : > { %v901_v34 = vsel %vm882_vm5, %v847_v23, %v900_v30  ;;  %v3731_v30 = vand.u32 4294901760, %v909_v25 }
 0x128   : > { %v857_v8 = vsel %vm601_vm0, %v792_v3, 0.0  ;;  %v902_v44 = vsel %vm884_vm6, %v856_v35, %v901_v34  ;;  %v3684_v3 = vsub.f32 %v914_v58, %v3674_v60 }
 0x129   : > { %v859_v11 = vadd.f32 %v858_v1, %v857_v8  ;;  %v913_v1 = vld [vmem:[#allocation7 + $0x28] sm:$0xff]  ;;  %v964_v8 = vsub.f32 %v3672_v59, %v963_v2  ;;  %v3745_v53 = vsub.f32 %v909_v25, %v3731_v30 }
 0x12a   : > { %v3686_v5 = vand.u32 4294901760, %v913_v1  ;;  %v969_v9 = vand.u32 4294901760, %v3684_v3  ;;  %1027 = vmatpush.msra.mxu2 %v3684_v3 }
 0x12b   : > { %v860_v16 = vrot.slane %v859_v11, 4  ;;  %v965_v13 = vand.u32 4294901760, %v964_v8  ;;  %v4617_v18 = vand.u32 4294901760, %v3745_v53 }
 0x12c   : > { %v3698_v10 = vsub.f32 %v913_v1, %v3686_v5  ;;  %933 = vmatpush.msra.mxu0 %v3686_v5  ;;  %1065 = vmatpush.msra.mxu3 %v3686_v5  ;;  %v970_v14 = vsub.f32 %v3684_v3, %v969_v9 }
 0x12d   : > { %v861_v20 = vadd.f32 %v860_v16, %v859_v11  ;;  %v3661_v48 = vpop.permute.xlu1 %486  ;;  %v3702_v11 = vand.u32 4294901760, %v912_v7  ;;  %966 = vmatpush.msra.mxu1 %v965_v13  ;;  %v1000_v25 = vsub.f32 %v3745_v53, %v4617_v18 }
 0x12e   : > { %v975_v15 = vand.u32 4294901760, %v3698_v10  ;;  %1030 = vmatpush.msra.mxu2 %v3698_v10  ;;  %v971_v19 = vand.u32 4294901760, %v970_v14  ;;  %v500_v22 = vpop.permute.xlu0 %499 }
 0x12f   : > { %v862_v24 = vrot.slane %v861_v20, 2  ;;  %v3711_v16 = vsub.f32 %v912_v7, %v3702_v11  ;;  %935 = vmatpush.msra.mxu0 %v3702_v11  ;;  %1067 = vmatpush.msra.mxu3 %v3702_v11  ;;  %v587_v1 = vmul.f32 %v500_v22, %v3584_v36 }
 0x130   : > { %972 = vmatpush.msra.mxu1 %v971_v19  ;;  %v585_v19 = vmul.f32 %v3661_v48, %v3573_v29 }
 0x131   : > { %v863_v27 = vadd.f32 %v862_v24, %v861_v20  ;;  %v976_v20 = vsub.f32 %v3698_v10, %v975_v15  ;;  %v981_v23 = vand.u32 4294901760, %v3711_v16  ;;  %v3724_v24 = vsub.f32 %v911_v12, %v3713_v17  ;;  %1033 = vmatpush.msra.mxu2 %v3711_v16  ;;  %937 = vmatpush.msra.mxu0 %v3713_v17 }
 0x132   : > { %1069 = vmatpush.msra.mxu3 %v3713_v17 }
 0x133   : > { %v864_v33 = vrot.slane %v863_v27, 1  ;;  %v982_v35 = vsub.f32 %v3711_v16, %v981_v23  ;;  %1036 = vmatpush.msra.mxu2 %v3724_v24  ;;  %939 = vmatpush.msra.mxu0 %v3720_v21 }
 0x134   : > { %1071 = vmatpush.msra.mxu3 %v3720_v21 }
 0x135   : > { %v865_v40 = vadd.f32 %v864_v33, %v863_v27  ;;  %v3690_v6 = vpop.permute.xlu2 %544  ;;  %v977_v27 = vand.u32 4294901760, %v976_v20  ;;  %v3733_v33 = vand.u32 4294901760, %v908_v26  ;;  %v983_v12 = vand.u32 4294901760, %v982_v35  ;;  %1039 = vmatpush.msra.mxu2 %v3729_v28  ;;  %941 = vmatpush.msra.mxu0 %v3731_v30 }
 0x136   : > { %1073 = vmatpush.msra.mxu3 %v3731_v30 }
 0x137   : > { %v903_v45 = vsel %vm886_vm7, %v865_v40, %v902_v44  ;;  %v987_v40 = vand.u32 4294901760, %v3724_v24  ;;  %v589_v44 = vmul.f32 %v513_v50, %v3590_v38  ;;  %978 = vmatpush.msra.mxu1 %v977_v27  ;;  %v3748_v58 = vsub.f32 %v908_v26, %v3733_v33  ;;  %1042 = vmatpush.msra.mxu2 %v3745_v53 }
 0x138   : > { %904 = vrot.lane.b32.xlu2 %v903_v45, %s3341_s27  ;;  %v993_v45 = vand.u32 4294901760, %v3729_v28  ;;  %943 = vmatpush.msra.mxu0 %v3733_v33  ;;  %v591_v27 = vmul.f32 %v3667_v52, %v3587_v37  ;;  %v602_v52 = vsel %vm601_vm0, %v585_v19, 0.0 }
 0x139   : > { %v988_v50 = vsub.f32 %v3724_v24, %v987_v40  ;;  %984 = vmatpush.msra.mxu1 %v983_v12  ;;  %1075 = vmatpush.msra.mxu3 %v3733_v33  ;;  %v620_v48 = vsel %vm601_vm0, %v589_v44, 0.0  ;;  %v565_v12 = vpop.permute.xlu0 %564  ;;  %v1001_v44 = vand.u32 4294901760, %v1000_v25 }
 0x13a   : > { %v994_v14 = vsub.f32 %v3729_v28, %v993_v45  ;;  %1045 = vmatpush.msra.mxu2 %v3748_v58  ;;  %1094 = vmatpush.msrb.mxu0 %v963_v2  ;;  %v597_v18 = vmul.f32 %v565_v12, %v3619_v57  ;;  %v629_v25 = vsel %vm601_vm0, %v591_v27, 0.0 }
 0x13b   : > { %v989_v20 = vand.u32 4294901760, %v988_v50 }
 0x13c   : > { %v995_v22 = vand.u32 4294901760, %v994_v14  ;;  %v594_v14 = vmul.f32 %v3690_v6, %v3597_v41  ;;  %1098 = vmatpush.msrb.mxu0 %v969_v9 }
 0x13d   : > { %v3663_v49 = vpop.permute.xlu1 %505  ;;  %v558_v8 = vpop.permute.xlu2 %557  ;;  %990 = vmatpush.msra.mxu1 %v989_v20 }
 0x13e   : > { %v588_v7 = vmul.f32 %v3663_v49, %v3579_v32  ;;  %v4616_v49 = vand.u32 4294901760, %v3748_v58  ;;  %v639_v19 = vsel %vm601_vm0, %v594_v14, 0.0  ;;  %1102 = vmatpush.msrb.mxu0 %v975_v15 }
 0x13f   : > { %996 = vmatpush.msra.mxu1 %v995_v22 }
 0x140   : > { %v1006_v26 = vsub.f32 %v3748_v58, %v4616_v49  ;;  %v612_v35 = vsel %vm601_vm0, %v588_v7, 0.0  ;;  %1106 = vmatpush.msrb.mxu0 %v981_v23 }
 0x141   : > { %1002 = vmatpush.msra.mxu1 %v1001_v44 }
 0x142   : > { %v1007_v49 = vand.u32 4294901760, %v1006_v26  ;;  %1110 = vmatpush.msrb.mxu0 %v987_v40  ;;  %v4636_v40 = vand.u32 4294901760, %v3745_v53 }
 0x144   : > { %1008 = vmatpush.msra.mxu1 %v1007_v49  ;;  %1114 = vmatpush.msrb.mxu0 %v993_v45 }
 0x145   : > { %v3665_v51 = vpop.permute.xlu1 %518 }
 0x146   : > { %v590_v13 = vmul.f32 %v3665_v51, %v3593_v39  ;;  %v586_v51 = vmul.f32 %v3659_v47, %v3576_v31  ;;  %v611_v47 = vsel %vm601_vm0, %v587_v1, 0.0  ;;  %v596_v1 = vmul.f32 %v558_v8, %v3630_v4  ;;  %1137 = vmatpush.msrb.mxu1 %v3669_v54  ;;  %1118 = vmatpush.msrb.mxu0 %v4636_v40 }
 0x148   : > { %v621_v50 = vsel %vm601_vm0, %v590_v13, 0.0  ;;  %v613_v13 = vadd.f32 %v612_v35, %v611_v47  ;;  %v603_v59 = vsel %vm601_vm0, %v586_v51, 0.0  ;;  %v648_v3 = vsel %vm601_vm0, %v596_v1, 0.0  ;;  %1139 = vmatpush.msrb.mxu1 %v3674_v60 }
 0x149   : > { %v622_v2 = vadd.f32 %v621_v50, %v620_v48 }
 0x14a   : > { %v614_v51 = vrot.slane %v613_v13, 4  ;;  %1141 = vmatpush.msrb.mxu1 %v3686_v5  ;;  %v4637_v5 = vand.u32 4294901760, %v3748_v58 }
 0x14b   : > { %v623_v10 = vrot.slane %v622_v2, 4 }
 0x14c   : > { %v615_v12 = vadd.f32 %v614_v51, %v613_v13  ;;  %1143 = vmatpush.msrb.mxu1 %v3702_v11  ;;  %1122 = vmatpush.msrb.mxu0 %v4637_v5 }
 0x14d   : > { %v578_v8 = vpop.permute.xlu2 %577  ;;  %v624_v23 = vadd.f32 %v623_v10, %v622_v2 }
 0x14e   : > { %v599_v48 = vmul.f32 %v578_v8, %v3647_v55  ;;  %1145 = vmatpush.msrb.mxu1 %v3713_v17 }
 0x14f   : > { %v625_v28 = vrot.slane %v624_v23, 2 }
 0x150   : > { %v665_v54 = vsel %vm601_vm0, %v599_v48, 0.0  ;;  %1147 = vmatpush.msrb.mxu1 %v3720_v21 }
 0x151   : > { %v626_v2 = vadd.f32 %v625_v28, %v624_v23 }
 0x152   : > { %1149 = vmatpush.msrb.mxu1 %v3731_v30 }
 0x154   : > { %1151 = vmatpush.msrb.mxu1 %v3733_v33 }
 0x155   : > { %v3680_v63 = vpop.permute.xlu1 %538 }
 0x156   : > { %v593_v0 = vmul.f32 %v3680_v63, %v3605_v46  ;;  %v592_v63 = vmul.f32 %v3678_v62, %v3600_v42  ;;  %v656_v62 = vsel %vm601_vm0, %v597_v18, 0.0 }
 0x158   : > { %v638_v22 = vsel %vm601_vm0, %v593_v0, 0.0  ;;  %v630_v0 = vsel %vm601_vm0, %v592_v63, 0.0 }
 0x159   : > { %v640_v15 = vadd.f32 %v639_v19, %v638_v22  ;;  %v631_v27 = vadd.f32 %v630_v0, %v629_v25 }
 0x15b   : > { %v641_v50 = vrot.slane %v640_v15, 4  ;;  %v632_v14 = vrot.slane %v631_v27, 4 }
 0x15d   : > { %v552_v34 = vpop.permute.xlu1 %551  ;;  %v642_v45 = vadd.f32 %v641_v50, %v640_v15  ;;  %v633_v13 = vadd.f32 %v632_v14, %v631_v27 }
 0x15e   : > { %v595_v7 = vmul.f32 %v552_v34, %v3616_v56  ;;  %v604_v34 = vadd.f32 %v603_v59, %v602_v52 }
 0x15f   : > { %v643_v8 = vrot.slane %v642_v45, 2 }
 0x160   : > { %v647_v9 = vsel %vm601_vm0, %v595_v7, 0.0  ;;  %v605_v47 = vrot.slane %v604_v34, 4  ;;  %v616_v7 = vrot.slane %v615_v12, 2 }
 0x161   : > { %v649_v35 = vadd.f32 %v648_v3, %v647_v9  ;;  %v627_v3 = vrot.slane %v626_v2, 1  ;;  %v644_v9 = vadd.f32 %v643_v8, %v642_v45 }
 0x162   : > { %v606_v44 = vadd.f32 %v605_v47, %v604_v34  ;;  %v617_v63 = vadd.f32 %v616_v7, %v615_v12  ;;  %v634_v34 = vrot.slane %v633_v13, 2 }
 0x163   : > { %v650_v60 = vrot.slane %v649_v35, 4  ;;  %v628_v10 = vadd.f32 %v627_v3, %v626_v2  ;;  %v645_v30 = vrot.slane %v644_v9, 1 }
 0x164   : > { %v618_v22 = vrot.slane %v617_v63, 1  ;;  %v635_v51 = vadd.f32 %v634_v34, %v633_v13 }
 0x165   : > { %v651_v59 = vadd.f32 %v650_v60, %v649_v35  ;;  %v646_v12 = vadd.f32 %v645_v30, %v644_v9 }
 0x166   : > { %v619_v48 = vadd.f32 %v618_v22, %v617_v63  ;;  %v636_v15 = vrot.slane %v635_v51, 1 }
 0x167   : > { %v652_v19 = vrot.slane %v651_v59, 2 }
 0x169   : > { %v653_v21 = vadd.f32 %v652_v19, %v651_v59 }
 0x16b   : > { %v654_v47 = vrot.slane %v653_v21, 1 }
 0x16d   : > { %v571_v20 = vpop.permute.xlu1 %570 }
 0x16e   : > { %v598_v6 = vmul.f32 %v571_v20, %v3624_v61 }
 0x170   : > { %v657_v26 = vsel %vm601_vm0, %v598_v6, 0.0  ;;  %v607_v6 = vrot.slane %v606_v44, 2 }
 0x171   : > { %v658_v18 = vadd.f32 %v657_v26, %v656_v62 }
 0x172   : > { %v608_v17 = vadd.f32 %v607_v6, %v606_v44 }
 0x173   : > { %v659_v52 = vrot.slane %v658_v18, 4 }
 0x174   : > { %v609_v62 = vrot.slane %v608_v17, 1 }
 0x175   : > { %v584_v49 = vpop.permute.xlu1 %583  ;;  %v660_v11 = vadd.f32 %v659_v52, %v658_v18 }
 0x176   : > { %v600_v16 = vmul.f32 %v584_v49, %v3643_v43  ;;  %v610_v27 = vadd.f32 %v609_v62, %v608_v17 }
 0x177   : > { %v661_v58 = vrot.slane %v660_v11, 2 }
 0x178   : > { %v666_v24 = vsel %vm601_vm0, %v600_v16, 0.0  ;;  %v875_v18 = vsel %vm874_vm1, %v619_v48, %v610_v27  ;;  %v655_v16 = vadd.f32 %v654_v47, %v653_v21 }
 0x179   : > { %v667_v1 = vadd.f32 %v666_v24, %v665_v54  ;;  %v662_v26 = vadd.f32 %v661_v58, %v660_v11  ;;  %v877_v49 = vsel %vm876_vm2, %v628_v10, %v875_v18  ;;  %v637_v54 = vadd.f32 %v636_v15, %v635_v51 }
 0x17b   : > { %v668_v20 = vrot.slane %v667_v1, 4  ;;  %v663_v35 = vrot.slane %v662_v26, 1  ;;  %v879_v14 = vsel %vm878_vm3, %v637_v54, %v877_v49 }
 0x17c   : > { %v881_v44 = vsel %vm880_vm4, %v646_v12, %v879_v14 }
 0x17d   : > { %v669_v53 = vadd.f32 %v668_v20, %v667_v1  ;;  %v664_v23 = vadd.f32 %v663_v35, %v662_v26  ;;  %v883_v60 = vsel %vm882_vm5, %v655_v16, %v881_v44 }
 0x17f   : > { %v670_v25 = vrot.slane %v669_v53, 2  ;;  %v885_v24 = vsel %vm884_vm6, %v664_v23, %v883_v60 }
 0x181   : > { %v671_v0 = vadd.f32 %v670_v25, %v669_v53 }
 0x183   : > { %v672_v33 = vrot.slane %v671_v0, 1 }
 0x185   : > { %v673_v50 = vadd.f32 %v672_v33, %v671_v0 }
 0x187   : > { %v887_v52 = vsel %vm886_vm7, %v673_v50, %v885_v24 }
 0x192   : > { %v905_v40 = vpop.permute.xlu2 %904 }
 0x193   : > { %v907_v1 = vsel %vm601_vm0, %v887_v52, %v905_v40 }
 0x194   : > { %v918_v7 = vsel %vm916_vm8, %v907_v1, 0 }
 0x195   : > { %v944_v5 = vand.u32 4294901760, %v918_v7 }
 0x197   : > { %v945_v28 = vsub.f32 %v918_v7, %v944_v5  ;;  %1010 = vmatmul.f32.vlgmr.msra.gmra.mxu1 %v944_v5 }
 0x199   : > { %1048 = vmatmul.f32.vlgmr.msra.gmra.mxu2 %v945_v28  ;;  %v946_v45 = vand.u32 4294901760, %v945_v28 }
 0x19b   : > { %1079 = vmatmul.f32.vlgmr.msra.gmra.mxu3 %v946_v45  ;;  %v947_v20 = vsub.f32 %v945_v28, %v946_v45 }
 0x19d   : > { %v948_v13 = vand.u32 4294901760, %v947_v20 }
 0x19f   : > { %949 = vmatmul.f32.vlgmr.msra.gmra.mxu0 %v948_v13  ;;  %1153 = vmatmul.f32.vlgmr.msrb.gmra.mxu1 %v944_v5 }
 0x1a7   : > { %1124 = vmatmul.f32.vlgmr.msrb.gmra.mxu0 %v944_v5 }
 0x214   : > { %v1011_v6 = vpop.f32.mrf.mxu1 }
 0x21c   : > { %v950_v59 = vpop.f32.mrf.mxu0  ;;  %v1049_v63 = vpop.f32.mrf.mxu2 }
 0x21d   : > { %v1012_v11 = vadd.f32 %v1011_v6, %v950_v59  ;;  %v1154_v19 = vpop.f32.mrf.mxu1 }
 0x21e   : > { %v1080_v2 = vpop.f32.mrf.mxu3 }
 0x21f   : > { %v1050_v53 = vadd.f32 %v1049_v63, %v1012_v11 }
 0x221   : > { %v1081_v8 = vadd.f32 %v1080_v2, %v1050_v53 }
 0x224   : > { %v1125_v34 = vpop.f32.mrf.mxu0 }
 0x225   : > { %v1126_v17 = vadd.f32 %v1125_v34, %v1081_v8 }
 0x227   : > { %v1155_v58 = vadd.f32 %v1154_v19, %v1126_v17 }
 0x229   : > { %v1165_v22 = vperm.slane %v1155_v58, 0  ;;  %v1159_v25 = vrot.slane %v1155_v58, 2  ;;  %v1158_v3 = vrot.slane %v1155_v58, 1  ;;  %v1160_v62 = vrot.slane %v1155_v58, 3 }
 0x22a   : > { %v1162_v21 = vrot.slane %v1155_v58, 5  ;;  %v1161_v26 = vrot.slane %v1155_v58, 4  ;;  %v1163_v30 = vrot.slane %v1155_v58, 6  ;;  %v1164_v15 = vrot.slane %v1155_v58, 7 }
 0x22b   : > { %1670 = vrot.lane.b32.xlu0 %v1165_v22, %s3342_s19  ;;  %v1167_v9 = vperm.slane %v1159_v25, 0  ;;  %v1166_v51 = vperm.slane %v1158_v3, 0  ;;  %v1168_v48 = vperm.slane %v1160_v62, 0  ;;  %v1181_v35 = vmul.f32 %v1165_v22, %v3573_v29 }
 0x22c   : > { %v1170_v0 = vperm.slane %v1162_v21, 0  ;;  %v1169_v10 = vperm.slane %v1161_v26, 0  ;;  %v1171_v27 = vperm.slane %v1163_v30, 0  ;;  %v1172_v47 = vperm.slane %v1164_v15, 0 }
 0x22d   : > { %1674 = vrot.lane.b32.xlu2 %v1167_v9, %s3342_s19  ;;  %1672 = vrot.lane.b32.xlu1 %v1166_v51, %s3342_s19  ;;  %v1197_v18 = vsel %vm601_vm0, %v1181_v35, 0.0  ;;  %v1182_v33 = vmul.f32 %v1165_v22, %v3576_v31  ;;  %v1184_v49 = vmul.f32 %v1166_v51, %v3579_v32  ;;  %v1183_v12 = vmul.f32 %v1166_v51, %v3584_v36 }
 0x22e   : > { %v1185_v50 = vmul.f32 %v1167_v9, %v3590_v38  ;;  %v1187_v14 = vmul.f32 %v1168_v48, %v3587_v37  ;;  %v1186_v44 = vmul.f32 %v1167_v9, %v3593_v39  ;;  %v1188_v52 = vmul.f32 %v1168_v48, %v3600_v42 }
 0x22f   : > { %v1200_v54 = vsel %vm601_vm0, %v1182_v33, 0.0  ;;  %v1206_v16 = vsel %vm601_vm0, %v1184_v49, 0.0  ;;  %v1203_v23 = vsel %vm601_vm0, %v1183_v12, 0.0  ;;  %v1190_v1 = vmul.f32 %v1169_v10, %v3597_v41 }
 0x230   : > { %v1209_v60 = vsel %vm601_vm0, %v1185_v50, 0.0  ;;  %v1215_v24 = vsel %vm601_vm0, %v1187_v14, 0.0  ;;  %v1212_v40 = vsel %vm601_vm0, %v1186_v44, 0.0  ;;  %v1189_v7 = vmul.f32 %v1169_v10, %v3605_v46 }
 0x231   : > { %v1218_v5 = vsel %vm601_vm0, %v1188_v52, 0.0  ;;  %v1224_v28 = vsel %vm601_vm0, %v1190_v1, 0.0  ;;  %v1191_v20 = vmul.f32 %v1170_v0, %v3616_v56  ;;  %v1193_v13 = vmul.f32 %v1171_v27, %v3619_v57 }
 0x232   : > { %v1221_v45 = vsel %vm601_vm0, %v1189_v7, 0.0  ;;  %v1192_v6 = vmul.f32 %v1170_v0, %v3630_v4  ;;  %v1194_v53 = vmul.f32 %v1171_v27, %v3624_v61  ;;  %v1196_v2 = vmul.f32 %v1172_v47, %v3643_v43 }
 0x233   : > { %1676 = vrot.lane.b32.xlu0 %v1168_v48, %s3342_s19  ;;  %v1227_v59 = vsel %vm601_vm0, %v1191_v20, 0.0  ;;  %v1233_v11 = vsel %vm601_vm0, %v1193_v13, 0.0  ;;  %v1195_v8 = vmul.f32 %v1172_v47, %v3647_v55  ;;  %v4638_v7 = vlaneseq }
 0x234   : > { %v1230_v63 = vsel %vm601_vm0, %v1192_v6, 0.0  ;;  %v1236_v34 = vsel %vm601_vm0, %v1194_v53, 0.0  ;;  %v1242_v17 = vsel %vm601_vm0, %v1196_v2, 0.0 }
 0x235   : > { %1680 = vrot.lane.b32.xlu2 %v1170_v0, %s3342_s19  ;;  %1678 = vrot.lane.b32.xlu1 %v1169_v10, %s3342_s19  ;;  %v1239_v19 = vsel %vm601_vm0, %v1195_v8, 0.0 }
 0x23b   : > { %1682 = vrot.lane.b32.xlu0 %v1171_v27, %s3342_s19 }
 0x23d   : > { %1684 = vrot.lane.b32.xlu1 %v1172_v47, %s3342_s19 }
 0x25e   : > { %1198 = vadd.xlane.f32.xlu2 %v1197_v18 }
 0x265   : > { %1201 = vadd.xlane.f32.xlu0 %v1200_v54 }
 0x266   : > { %1207 = vadd.xlane.f32.xlu2 %v1206_v16 }
 0x267   : > { %1204 = vadd.xlane.f32.xlu1 %v1203_v23 }
 0x26d   : > { %1210 = vadd.xlane.f32.xlu0 %v1209_v60 }
 0x26e   : > { %1216 = vadd.xlane.f32.xlu2 %v1215_v24 }
 0x26f   : > { %1213 = vadd.xlane.f32.xlu1 %v1212_v40 }
 0x275   : > { %1219 = vadd.xlane.f32.xlu0 %v1218_v5  ;;  %v3922_v5 = vand.u32 127, %v4638_v7 }
 0x276   : > { %1225 = vadd.xlane.f32.xlu2 %v1224_v28 }
 0x277   : > { %1222 = vadd.xlane.f32.xlu1 %v1221_v45  ;;  %v3929_v45 = vadd.s32 4294967288, %v3922_v5 }
 0x27d   : > { %1228 = vadd.xlane.f32.xlu0 %v1227_v59 }
 0x27e   : > { %1234 = vadd.xlane.f32.xlu2 %v1233_v11 }
 0x27f   : > { %1231 = vadd.xlane.f32.xlu1 %v1230_v63 }
 0x285   : > { %1237 = vadd.xlane.f32.xlu0 %v1236_v34 }
 0x286   : > { %1243 = vadd.xlane.f32.xlu2 %v1242_v17 }
 0x287   : > { %1240 = vadd.xlane.f32.xlu1 %v1239_v19  ;;  %v1675_v21 = vpop.permute.xlu2 %1674 }
 0x288   : > { %v1699_v48 = vmul.f32 %v1675_v21, %v3593_v39  ;;  %v1698_v27 = vmul.f32 %v1675_v21, %v3590_v38 }
 0x28a   : > { %v1725_v10 = vsel %vm601_vm0, %v1699_v48, 0.0 }
 0x28f   : > { %v1681_v35 = vpop.permute.xlu2 %1680 }
 0x290   : > { %v1705_v49 = vmul.f32 %v1681_v35, %v3630_v4  ;;  %v1704_v23 = vmul.f32 %v1681_v35, %v3616_v56 }
 0x29d   : > { %v1671_v58 = vpop.permute.xlu0 %1670 }
 0x29e   : > { %v1694_v22 = vmul.f32 %v1671_v58, %v3573_v29  ;;  %v1695_v25 = vmul.f32 %v1671_v58, %v3576_v31 }
 0x29f   : > { %v1673_v3 = vpop.permute.xlu1 %1672 }
 0x2a0   : > { %v1696_v9 = vmul.f32 %v1673_v3, %v3584_v36  ;;  %v1713_v51 = vsel %vm601_vm0, %v1695_v25, 0.0  ;;  %v1710_v62 = vsel %vm601_vm0, %v1694_v22, 0.0  ;;  %v1697_v0 = vmul.f32 %v1673_v3, %v3579_v32 }
 0x2a1   : > { %1714 = vadd.xlane.f32.xlu0 %v1713_v51  ;;  %1711 = vadd.xlane.f32.xlu2 %v1710_v62 }
 0x2a2   : > { %v1716_v26 = vsel %vm601_vm0, %v1696_v9, 0.0  ;;  %v1719_v36 = vsel %vm601_vm0, %v1697_v0, 0.0 }
 0x2a3   : > { %1717 = vadd.xlane.f32.xlu1 %v1716_v26 }
 0x2a5   : > { %v1677_v29 = vpop.permute.xlu0 %1676 }
 0x2a6   : > { %v1700_v31 = vmul.f32 %v1677_v29, %v3587_v37  ;;  %v1722_v37 = vsel %vm601_vm0, %v1698_v27, 0.0  ;;  %v1701_v12 = vmul.f32 %v1677_v29, %v3600_v42 }
 0x2a7   : > { %v1679_v30 = vpop.permute.xlu1 %1678 }
 0x2a8   : > { %v1728_v15 = vsel %vm601_vm0, %v1700_v31, 0.0  ;;  %v1702_v47 = vmul.f32 %v1679_v30, %v3605_v46  ;;  %v1703_v39 = vmul.f32 %v1679_v30, %v3597_v41  ;;  %v1743_v46 = vsel %vm601_vm0, %v1705_v49, 0.0 }
 0x2a9   : > { %1726 = vadd.xlane.f32.xlu0 %v1725_v10  ;;  %1720 = vadd.xlane.f32.xlu2 %v1719_v36  ;;  %v1731_v41 = vsel %vm601_vm0, %v1701_v12, 0.0 }
 0x2aa   : > { %v1734_v32 = vsel %vm601_vm0, %v1702_v47, 0.0  ;;  %v1737_v18 = vsel %vm601_vm0, %v1703_v39, 0.0 }
 0x2ab   : > { %1729 = vadd.xlane.f32.xlu1 %v1728_v15 }
 0x2ad   : > { %v1683_v33 = vpop.permute.xlu0 %1682 }
 0x2ae   : > { %v1706_v38 = vmul.f32 %v1683_v33, %v3619_v57  ;;  %v1740_v57 = vsel %vm601_vm0, %v1704_v23, 0.0  ;;  %v1707_v44 = vmul.f32 %v1683_v33, %v3624_v61 }
 0x2af   : > { %v1685_v54 = vpop.permute.xlu1 %1684 }
 0x2b0   : > { %v1746_v16 = vsel %vm601_vm0, %v1706_v38, 0.0  ;;  %v1708_v50 = vmul.f32 %v1685_v54, %v3647_v55  ;;  %v1709_v4 = vmul.f32 %v1685_v54, %v3643_v43  ;;  %v1749_v60 = vsel %vm601_vm0, %v1707_v44, 0.0 }
 0x2b1   : > { %1735 = vadd.xlane.f32.xlu0 %v1734_v32  ;;  %1723 = vadd.xlane.f32.xlu2 %v1722_v37 }
 0x2b2   : > { %v1752_v42 = vsel %vm601_vm0, %v1708_v50, 0.0  ;;  %v1755_v14 = vsel %vm601_vm0, %v1709_v4, 0.0 }
 0x2b3   : > { %1738 = vadd.xlane.f32.xlu1 %v1737_v18 }
 0x2b9   : > { %1744 = vadd.xlane.f32.xlu0 %v1743_v46  ;;  %1732 = vadd.xlane.f32.xlu2 %v1731_v41 }
 0x2bb   : > { %1747 = vadd.xlane.f32.xlu1 %v1746_v16 }
 0x2c1   : > { %1753 = vadd.xlane.f32.xlu0 %v1752_v42  ;;  %1741 = vadd.xlane.f32.xlu2 %v1740_v57 }
 0x2c3   : > { %1756 = vadd.xlane.f32.xlu1 %v1755_v14 }
 0x2c9   : > { %1750 = vadd.xlane.f32.xlu2 %v1749_v60 }
 0x2d1   : > { %v3907_v24 = vpop.xlane.xlu2 %1198 }
 0x2d2   : > { %v1263_v34 = vperm.slane %v3907_v24, %v3922_v5 }
 0x2d8   : > { %v3909_v56 = vpop.xlane.xlu0 %1201 }
 0x2d9   : > { %v3911_v55 = vpop.xlane.xlu2 %1207  ;;  %v1265_v11 = vperm.slane %v3909_v56, %v3929_v45 }
 0x2da   : > { %v3913_v43 = vpop.xlane.xlu1 %1204  ;;  %v1269_v13 = vperm.slane %v3911_v55, %v3929_v45 }
 0x2db   : > { %v1268_v6 = vperm.slane %v3913_v43, %v3922_v5  ;;  %v1267_v9 = vsel %vm1266_vm9, %v1265_v11, %v1263_v34 }
 0x2dd   : > { %v1270_v17 = vsel %vm1266_vm9, %v1269_v13, %v1268_v6 }
 0x2de   : > { %v1289_v21 = vsel %vm874_vm1, %v1270_v17, %v1267_v9 }
 0x2e0   : > { %v3915_v40 = vpop.xlane.xlu0 %1210 }
 0x2e1   : > { %v3917_v52 = vpop.xlane.xlu2 %1216  ;;  %v1271_v2 = vperm.slane %v3915_v40, %v3922_v5 }
 0x2e2   : > { %v3919_v1 = vpop.xlane.xlu1 %1213  ;;  %v1274_v19 = vperm.slane %v3917_v52, %v3922_v5 }
 0x2e3   : > { %v1272_v59 = vperm.slane %v3919_v1, %v3929_v45 }
 0x2e5   : > { %v1273_v22 = vsel %vm1266_vm9, %v1272_v59, %v1271_v2 }
 0x2e6   : > { %v1290_v26 = vsel %vm876_vm2, %v1273_v22, %v1289_v21 }
 0x2e8   : > { %v3924_v61 = vpop.xlane.xlu0 %1219 }
 0x2e9   : > { %v3926_v28 = vpop.xlane.xlu2 %1225  ;;  %v1275_v63 = vperm.slane %v3924_v61, %v3929_v45 }
 0x2ea   : > { %v3931_v20 = vpop.xlane.xlu1 %1222  ;;  %v1278_v25 = vperm.slane %v3926_v28, %v3929_v45 }
 0x2eb   : > { %v1277_v3 = vperm.slane %v3931_v20, %v3922_v5  ;;  %v1276_v51 = vsel %vm1266_vm9, %v1275_v63, %v1274_v19 }
 0x2ec   : > { %v1291_v0 = vsel %vm878_vm3, %v1276_v51, %v1290_v26 }
 0x2ed   : > { %v1279_v29 = vsel %vm1266_vm9, %v1278_v25, %v1277_v3 }
 0x2ee   : > { %v1292_v39 = vsel %vm880_vm4, %v1279_v29, %v1291_v0 }
 0x2f0   : > { %v3943_v53 = vpop.xlane.xlu0 %1228 }
 0x2f1   : > { %v3947_v8 = vpop.xlane.xlu2 %1234  ;;  %v1280_v48 = vperm.slane %v3943_v53, %v3922_v5 }
 0x2f2   : > { %v3954_v58 = vpop.xlane.xlu1 %1231  ;;  %v1283_v36 = vperm.slane %v3947_v8, %v3922_v5 }
 0x2f3   : > { %v1281_v62 = vperm.slane %v3954_v58, %v3929_v45 }
 0x2f5   : > { %v1282_v31 = vsel %vm1266_vm9, %v1281_v62, %v1280_v48 }
 0x2f6   : > { %v1293_v35 = vsel %vm882_vm5, %v1282_v31, %v1292_v39 }
 0x2f8   : > { %v3972_v10 = vpop.xlane.xlu0 %1237 }
 0x2f9   : > { %v1284_v30 = vperm.slane %v3972_v10, %v3929_v45  ;;  %v3978_v15 = vpop.xlane.xlu2 %1243 }
 0x2fa   : > { %v1287_v27 = vperm.slane %v3978_v15, %v3929_v45  ;;  %v3982_v47 = vpop.xlane.xlu1 %1240 }
 0x2fb   : > { %v1286_v32 = vperm.slane %v3982_v47, %v3922_v5  ;;  %v1285_v37 = vsel %vm1266_vm9, %v1284_v30, %v1283_v36 }
 0x2fc   : > { %v1294_v18 = vsel %vm884_vm6, %v1285_v37, %v1293_v35 }
 0x2fd   : > { %v1288_v33 = vsel %vm1266_vm9, %v1287_v27, %v1286_v32 }
 0x2fe   : > { %v1295_v49 = vsel %vm886_vm7, %v1288_v33, %v1294_v18 }
 0x2ff   : > { %v1298_v12 = vsel %vm1297_vm10, %v1295_v49, -inf }
 0x300   : > { %1299 = vmax.xlane.f32.xlu1 %v1298_v12 }
 0x314   : > { %v3993_v38 = vpop.xlane.xlu0 %1714  ;;  %v3995_v46 = vpop.xlane.xlu2 %1711 }
 0x315   : > { %v1775_v13 = vperm.slane %v3993_v38, %v3929_v45  ;;  %v1774_v6 = vperm.slane %v3995_v46, %v3922_v5 }
 0x316   : > { %v3997_v41 = vpop.xlane.xlu1 %1717 }
 0x317   : > { %v1777_v59 = vperm.slane %v3997_v41, %v3922_v5  ;;  %v1776_v22 = vsel %vm1266_vm9, %v1775_v13, %v1774_v6  ;;  %v3343_v13 = vmov 0  }
 0x318   : > { %3051 = vset.pattern.permute.xlu0 %v3343_v13  ;;  %3050 = vset.pattern.permute.xlu2 %v3343_v13 }
 0x319   : > { %3052 = vset.pattern.permute.xlu1 %v3343_v13 }
 0x31c   : > { %v3999_v54 = vpop.xlane.xlu2 %1720  ;;  %v4001_v16 = vpop.xlane.xlu0 %1726 }
 0x31d   : > { %v1778_v60 = vperm.slane %v3999_v54, %v3929_v45  ;;  %v1781_v2 = vperm.slane %v4001_v16, %v3929_v45 }
 0x31e   : > { %v4003_v23 = vpop.xlane.xlu1 %1729 }
 0x31f   : > { %v1779_v34 = vsel %vm1266_vm9, %v1778_v60, %v1777_v59  ;;  %v1783_v17 = vperm.slane %v4003_v23, %v3922_v5 }
 0x320   : > { %v1798_v9 = vsel %vm874_vm1, %v1779_v34, %v1776_v22 }
 0x324   : > { %v4005_v50 = vpop.xlane.xlu2 %1723  ;;  %v4009_v42 = vpop.xlane.xlu0 %1735 }
 0x325   : > { %v1780_v7 = vperm.slane %v4005_v50, %v3922_v5  ;;  %v1786_v48 = vperm.slane %v4009_v42, %v3922_v5 }
 0x326   : > { %v4007_v4 = vpop.xlane.xlu1 %1738 }
 0x327   : > { %v1782_v19 = vsel %vm1266_vm9, %v1781_v2, %v1780_v7  ;;  %v1787_v51 = vperm.slane %v4007_v4, %v3929_v45 }
 0x328   : > { %v1799_v21 = vsel %vm876_vm2, %v1782_v19, %v1798_v9 }
 0x329   : > { %v1788_v27 = vsel %vm1266_vm9, %v1787_v51, %v1786_v48 }
 0x32c   : > { %v4011_v57 = vpop.xlane.xlu2 %1732  ;;  %v4015_v44 = vpop.xlane.xlu0 %1744 }
 0x32d   : > { %v1784_v11 = vperm.slane %v4011_v57, %v3929_v45  ;;  %v1790_v26 = vperm.slane %v4015_v44, %v3929_v45 }
 0x32e   : > { %v4013_v14 = vpop.xlane.xlu1 %1747 }
 0x32f   : > { %v1785_v25 = vsel %vm1266_vm9, %v1784_v11, %v1783_v17  ;;  %v1792_v39 = vperm.slane %v4013_v14, %v3922_v5 }
 0x330   : > { %v1800_v0 = vsel %vm878_vm3, %v1785_v25, %v1799_v21 }
 0x331   : > { %v1801_v35 = vsel %vm880_vm4, %v1788_v27, %v1800_v0 }
 0x334   : > { %v4029_v63 = vpop.xlane.xlu2 %1741  ;;  %v4052_v29 = vpop.xlane.xlu0 %1753 }
 0x335   : > { %v1789_v3 = vperm.slane %v4029_v63, %v3922_v5  ;;  %v1795_v37 = vperm.slane %v4052_v29, %v3922_v5 }
 0x336   : > { %v4044_v62 = vpop.xlane.xlu1 %1756 }
 0x337   : > { %v1791_v31 = vsel %vm1266_vm9, %v1790_v26, %v1789_v3  ;;  %v1796_v36 = vperm.slane %v4044_v62, %v3929_v45 }
 0x338   : > { %v1802_v33 = vsel %vm882_vm5, %v1791_v31, %v1801_v35 }
 0x339   : > { %v1797_v49 = vsel %vm1266_vm9, %v1796_v36, %v1795_v37 }
 0x33c   : > { %v4057_v30 = vpop.xlane.xlu2 %1750 }
 0x33d   : > { %v1793_v32 = vperm.slane %v4057_v30, %v3929_v45 }
 0x33f   : > { %v1794_v18 = vsel %vm1266_vm9, %v1793_v32, %v1792_v39 }
 0x340   : > { %v1803_v12 = vsel %vm884_vm6, %v1794_v18, %v1802_v33 }
 0x341   : > { %v1804_v60 = vsel %vm886_vm7, %v1797_v49, %v1803_v12 }
 0x342   : > { %v1806_v7 = vsel %vm1297_vm10, %v1804_v60, -inf }
 0x343   : > { %1807 = vmax.xlane.f32.xlu0 %v1806_v7 }
 0x373   : > { %v4073_v6 = vpop.xlane.xlu1 %1299 }
 0x374   : > { %v1303_v59 = vperm.slane %v4073_v6, 1  ;;  %v1302_v11 = vperm.slane %v4073_v6, 0  ;;  %v1304_v19 = vperm.slane %v4073_v6, 2  ;;  %v1307_v39 = vperm.slane %v4073_v6, 5 }
 0x375   : > { %v1309_v12 = vperm.slane %v4073_v6, 7  ;;  %v1308_v7 = vperm.slane %v4073_v6, 6 }
 0x376   : > { %v1320_v2 = vsub.f32 %v3913_v43, %v1303_v59  ;;  %v1319_v34 = vsub.f32 %v3909_v56, %v1302_v11  ;;  %v1318_v17 = vsub.f32 %v3907_v24, %v1302_v11  ;;  %v1323_v9 = vsub.f32 %v3919_v1, %v1304_v19 }
 0x377   : > { %v1322_v51 = vsub.f32 %v3915_v40, %v1304_v19  ;;  %v1321_v21 = vsub.f32 %v3911_v55, %v1303_v59  ;;  %v1306_v43 = vperm.slane %v4073_v6, 4  ;;  %v1305_v24 = vperm.slane %v4073_v6, 3 }
 0x378   : > { %v1338_v22 = vmul.f32 1.442695, %v1320_v2  ;;  %v1336_v25 = vmul.f32 1.442695, %v1319_v34  ;;  %v1334_v3 = vmul.f32 1.442695, %v1318_v17  ;;  %v1330_v2 = vsub.f32 %v3947_v8, %v1308_v7 }
 0x379   : > { %v1344_v26 = vmul.f32 1.442695, %v1323_v9  ;;  %v1342_v56 = vmul.f32 1.442695, %v1322_v51  ;;  %v1340_v0 = vmul.f32 1.442695, %v1321_v21  ;;  %v1326_v55 = vsub.f32 %v3931_v20, %v1306_v43 }
 0x37a   : > { %3055 = vpow2.f32 %v1338_v22  ;;  %v1325_v40 = vsub.f32 %v3924_v61, %v1305_v24  ;;  %v1324_v36 = vsub.f32 %v3917_v52, %v1305_v24  ;;  %v1329_v61 = vsub.f32 %v3954_v58, %v1307_v39 }
 0x37b   : > { %3057 = vpow2.f32 %v1336_v25  ;;  %v1350_v27 = vmul.f32 1.442695, %v1326_v55  ;;  %v1328_v52 = vsub.f32 %v3943_v53, %v1307_v39  ;;  %v1327_v33 = vsub.f32 %v3926_v28, %v1306_v43 }
 0x37c   : > { %3059 = vpow2.f32 %v1334_v3  ;;  %v1348_v32 = vmul.f32 1.442695, %v1325_v40  ;;  %v1346_v35 = vmul.f32 1.442695, %v1324_v36  ;;  %v1356_v49 = vmul.f32 1.442695, %v1329_v61 }
 0x37d   : > { %3061 = vpow2.f32 %v1344_v26  ;;  %v1354_v60 = vmul.f32 1.442695, %v1328_v52  ;;  %v1352_v59 = vmul.f32 1.442695, %v1327_v33  ;;  %v1332_v28 = vsub.f32 %v3982_v47, %v1309_v12 }
 0x37e   : > { %3063 = vpow2.f32 %v1342_v56  ;;  %v1331_v53 = vsub.f32 %v3972_v10, %v1308_v7  ;;  %v1358_v22 = vmul.f32 1.442695, %v1330_v2 }
 0x37f   : > { %3065 = vpow2.f32 %v1340_v0  ;;  %v1362_v34 = vmul.f32 1.442695, %v1332_v28 }
 0x380   : > { %v4086_v48 = vpop.eup %3055  ;;  %3067 = vpow2.f32 %v1350_v27  ;;  %v1360_v17 = vmul.f32 1.442695, %v1331_v53 }
 0x381   : > { %v4088_v31 = vpop.eup %3057  ;;  %1389 = vperm.xlu1 %3052, %v4086_v48   ;;  %3069 = vpow2.f32 %v1348_v32 }
 0x382   : > { %v4091_v1 = vpop.eup %3059  ;;  %1386 = vperm.xlu0 %3051, %v4088_v31   ;;  %3071 = vpow2.f32 %v1346_v35 }
 0x383   : > { %1383 = vperm.xlu2 %3050, %v4091_v1   ;;  %v4099_v37 = vpop.eup %3061  ;;  %3073 = vpow2.f32 %v1356_v49 }
 0x384   : > { %v4101_v18 = vpop.eup %3063  ;;  %3075 = vpow2.f32 %v1354_v60 }
 0x385   : > { %v4104_v20 = vpop.eup %3065  ;;  %3077 = vpow2.f32 %v1352_v59 }
 0x386   : > { %v4113_v13 = vpop.eup %3067  ;;  %3079 = vpow2.f32 %v1362_v34 }
 0x387   : > { %v4115_v11 = vpop.eup %3069  ;;  %3081 = vpow2.f32 %v1360_v17 }
 0x388   : > { %v4118_v58 = vpop.eup %3071  ;;  %3083 = vpow2.f32 %v1358_v22 }
 0x389   : > { %1398 = vperm.xlu1 %3052, %v4099_v37   ;;  %v4127_v19 = vpop.eup %3073 }
 0x38a   : > { %1395 = vperm.xlu0 %3051, %v4101_v18   ;;  %v4129_v25 = vpop.eup %3075 }
 0x38b   : > { %1392 = vperm.xlu2 %3050, %v4104_v20   ;;  %v4132_v3 = vpop.eup %3077 }
 0x38c   : > { %v4136_v10 = vpop.eup %3079 }
 0x38d   : > { %v4138_v8 = vpop.eup %3081 }
 0x38e   : > { %v4141_v47 = vpop.eup %3083 }
 0x391   : > { %1407 = vperm.xlu1 %3052, %v4113_v13  }
 0x392   : > { %1404 = vperm.xlu0 %3051, %v4115_v11  }
 0x393   : > { %1401 = vperm.xlu2 %3050, %v4118_v58  }
 0x399   : > { %1416 = vperm.xlu1 %3052, %v4127_v19  }
 0x39a   : > { %1413 = vperm.xlu0 %3051, %v4129_v25  }
 0x39b   : > { %1410 = vperm.xlu2 %3050, %v4132_v3  }
 0x3a1   : > { %1425 = vperm.xlu1 %3052, %v4136_v10  }
 0x3a2   : > { %1422 = vperm.xlu0 %3051, %v4138_v8  }
 0x3a3   : > { %1419 = vperm.xlu2 %3050, %v4141_v47  }
 0x3b6   : > { %v4145_v9 = vpop.xlane.xlu0 %1807 }
 0x3b7   : > { %v1811_v51 = vperm.slane %v4145_v9, 1  ;;  %v1810_v21 = vperm.slane %v4145_v9, 0  ;;  %v1812_v24 = vperm.slane %v4145_v9, 2  ;;  %v1814_v0 = vperm.slane %v4145_v9, 4 }
 0x3b8   : > { %v1815_v35 = vperm.slane %v4145_v9, 5  ;;  %v1817_v59 = vperm.slane %v4145_v9, 7  ;;  %v1816_v22 = vperm.slane %v4145_v9, 6 }
 0x3b9   : > { %v1828_v26 = vsub.f32 %v3997_v41, %v1811_v51  ;;  %v1827_v43 = vsub.f32 %v3993_v38, %v1810_v21  ;;  %v1826_v56 = vsub.f32 %v3995_v46, %v1810_v21  ;;  %v1830_v27 = vsub.f32 %v4005_v50, %v1812_v24 }
 0x3ba   : > { %v1834_v39 = vsub.f32 %v4009_v42, %v1814_v0  ;;  %v1829_v41 = vsub.f32 %v3999_v54, %v1811_v51  ;;  %v1813_v38 = vperm.slane %v4145_v9, 3  ;;  %v1837_v42 = vsub.f32 %v4015_v44, %v1815_v35 }
 0x3bb   : > { %v1846_v55 = vmul.f32 1.442695, %v1828_v26  ;;  %v1844_v40 = vmul.f32 1.442695, %v1827_v43  ;;  %v1842_v36 = vmul.f32 1.442695, %v1826_v56  ;;  %v1831_v49 = vsub.f32 %v4001_v16, %v1812_v24 }
 0x3bc   : > { %v1850_v32 = vmul.f32 1.442695, %v1830_v27  ;;  %v1858_v46 = vmul.f32 1.442695, %v1834_v39  ;;  %v1848_v52 = vmul.f32 1.442695, %v1829_v41  ;;  %v1832_v54 = vsub.f32 %v4003_v23, %v1813_v38 }
 0x3bd   : > { %3085 = vpow2.f32 %v1846_v55  ;;  %v1864_v7 = vmul.f32 1.442695, %v1837_v42  ;;  %v1852_v53 = vmul.f32 1.442695, %v1831_v49  ;;  %v1835_v44 = vsub.f32 %v4007_v4, %v1814_v0 }
 0x3be   : > { %3087 = vpow2.f32 %v1844_v40  ;;  %v1854_v60 = vmul.f32 1.442695, %v1832_v54  ;;  %v1840_v16 = vsub.f32 %v4052_v29, %v1817_v59  ;;  %v1833_v34 = vsub.f32 %v4011_v57, %v1813_v38 }
 0x3bf   : > { %3089 = vpow2.f32 %v1842_v36  ;;  %v1860_v17 = vmul.f32 1.442695, %v1835_v44  ;;  %v1838_v29 = vsub.f32 %v4013_v14, %v1816_v22  ;;  %v1836_v57 = vsub.f32 %v4029_v63, %v1815_v35 }
 0x3c0   : > { %3091 = vpow2.f32 %v1850_v32  ;;  %v1870_v51 = vmul.f32 1.442695, %v1840_v16  ;;  %v1856_v26 = vmul.f32 1.442695, %v1833_v34  ;;  %v1841_v14 = vsub.f32 %v4044_v62, %v1817_v59 }
 0x3c1   : > { %3093 = vpow2.f32 %v1858_v46  ;;  %v1866_v9 = vmul.f32 1.442695, %v1838_v29  ;;  %v1862_v24 = vmul.f32 1.442695, %v1836_v57  ;;  %v1839_v63 = vsub.f32 %v4057_v30, %v1816_v22 }
 0x3c2   : > { %3095 = vpow2.f32 %v1848_v52  ;;  %v1872_v40 = vmul.f32 1.442695, %v1841_v14  ;;  %v1333_v62 = vsub.f32 %v3978_v15, %v1309_v12 }
 0x3c3   : > { %v4159_v61 = vpop.eup %3085  ;;  %3097 = vpow2.f32 %v1854_v60  ;;  %v1868_v27 = vmul.f32 1.442695, %v1839_v63 }
 0x3c4   : > { %v4161_v33 = vpop.eup %3087  ;;  %1897 = vperm.xlu1 %3052, %v4159_v61   ;;  %3099 = vpow2.f32 %v1864_v7  ;;  %v1364_v30 = vmul.f32 1.442695, %v1333_v62 }
 0x3c5   : > { %v4164_v50 = vpop.eup %3089  ;;  %1894 = vperm.xlu0 %3051, %v4161_v33   ;;  %3101 = vpow2.f32 %v1852_v53 }
 0x3c6   : > { %1891 = vperm.xlu2 %3050, %v4164_v50   ;;  %v4172_v28 = vpop.eup %3091  ;;  %3103 = vpow2.f32 %v1860_v17 }
 0x3c7   : > { %v4174_v2 = vpop.eup %3093  ;;  %3105 = vpow2.f32 %v1870_v51 }
 0x3c8   : > { %v4177_v23 = vpop.eup %3095  ;;  %3107 = vpow2.f32 %v1856_v26 }
 0x3c9   : > { %v4185_v21 = vpop.eup %3097  ;;  %3109 = vpow2.f32 %v1866_v9 }
 0x3ca   : > { %v4187_v43 = vpop.eup %3099  ;;  %3111 = vpow2.f32 %v1862_v24 }
 0x3cb   : > { %v4190_v4 = vpop.eup %3101  ;;  %3113 = vpow2.f32 %v1872_v40 }
 0x3cc   : > { %1903 = vperm.xlu1 %3052, %v4172_v28   ;;  %v4196_v56 = vpop.eup %3103  ;;  %3115 = vpow2.f32 %v1868_v27 }
 0x3cd   : > { %1915 = vperm.xlu0 %3051, %v4174_v2   ;;  %v4198_v0 = vpop.eup %3105  ;;  %3117 = vpow2.f32 %v1364_v30 }
 0x3ce   : > { %1900 = vperm.xlu2 %3050, %v4177_v23   ;;  %v4201_v55 = vpop.eup %3107 }
 0x3cf   : > { %v4207_v36 = vpop.eup %3109 }
 0x3d0   : > { %v4210_v39 = vpop.eup %3111 }
 0x3d1   : > { %v4216_v32 = vpop.eup %3113 }
 0x3d2   : > { %v4219_v38 = vpop.eup %3115 }
 0x3d3   : > { %v4224_v6 = vpop.eup %3117 }
 0x3d4   : > { %1909 = vperm.xlu1 %3052, %v4185_v21   ;;  %4639 = vst [vmem:[#allocation16_spill] sm:$0xff] %v4224_v6 }
 0x3d5   : > { %1924 = vperm.xlu0 %3051, %v4187_v43  }
 0x3d6   : > { %1906 = vperm.xlu2 %3050, %v4190_v4  }
 0x3dc   : > { %1918 = vperm.xlu1 %3052, %v4196_v56  }
 0x3dd   : > { %1933 = vperm.xlu0 %3051, %v4198_v0   ;;  %v1384_v41 = vpop.permute.xlu2 %1383 }
 0x3de   : > { %1912 = vperm.xlu2 %3050, %v4201_v55   ;;  %v1430_v15 = vperm.slane %v1384_v41, %v3922_v5 }
 0x3e4   : > { %1927 = vperm.xlu1 %3052, %v4207_v36  }
 0x3e5   : > { %v1393_v46 = vpop.permute.xlu2 %1392 }
 0x3e6   : > { %1921 = vperm.xlu2 %3050, %v4210_v39   ;;  %v1434_v52 = vperm.slane %v1393_v46, %v3929_v45 }
 0x3ec   : > { %1936 = vperm.xlu1 %3052, %v4216_v32  }
 0x3ed   : > { %v1402_v34 = vpop.permute.xlu2 %1401 }
 0x3ee   : > { %1930 = vperm.xlu2 %3050, %v4219_v38   ;;  %v1439_v51 = vperm.slane %v1402_v34, %v3922_v5 }
 0x3f3   : > { %v1390_v35 = vpop.permute.xlu1 %1389 }
 0x3f4   : > { %v1433_v54 = vperm.slane %v1390_v35, %v3922_v5  ;;  %v1387_v42 = vpop.permute.xlu0 %1386 }
 0x3f5   : > { %v1431_v12 = vperm.slane %v1387_v42, %v3929_v45  ;;  %v1411_v24 = vpop.permute.xlu2 %1410 }
 0x3f6   : > { %v1435_v49 = vsel %vm1266_vm9, %v1434_v52, %v1433_v54  ;;  %1428 = vperm.xlu2 %3050, %v4224_v6  }
 0x3f7   : > { %v1432_v60 = vsel %vm1266_vm9, %v1431_v12, %v1430_v15 }
 0x3f8   : > { %v1454_v7 = vsel %vm874_vm1, %v1435_v49, %v1432_v60 }
 0x3fb   : > { %v1399_v53 = vpop.permute.xlu1 %1398 }
 0x3fc   : > { %v1396_v59 = vpop.permute.xlu0 %1395  ;;  %v1437_v44 = vperm.slane %v1399_v53, %v3929_v45 }
 0x3fd   : > { %v1436_v16 = vperm.slane %v1396_v59, %v3922_v5  ;;  %v1420_v14 = vpop.permute.xlu2 %1419 }
 0x3ff   : > { %v1438_v17 = vsel %vm1266_vm9, %v1437_v44, %v1436_v16  ;;  %v1443_v16 = vperm.slane %v1411_v24, %v3929_v45 }
 0x400   : > { %v1455_v29 = vsel %vm876_vm2, %v1438_v17, %v1454_v7  ;;  %v1448_v17 = vperm.slane %v1420_v14, %v3922_v5 }
 0x403   : > { %v1408_v63 = vpop.permute.xlu1 %1407 }
 0x404   : > { %v1405_v22 = vpop.permute.xlu0 %1404  ;;  %v1442_v59 = vperm.slane %v1408_v63, %v3922_v5 }
 0x405   : > { %v1440_v26 = vperm.slane %v1405_v22, %v3929_v45 }
 0x406   : > { %v1444_v22 = vsel %vm1266_vm9, %v1443_v16, %v1442_v59 }
 0x407   : > { %v1441_v57 = vsel %vm1266_vm9, %v1440_v26, %v1439_v51 }
 0x408   : > { %v1456_v9 = vsel %vm878_vm3, %v1441_v57, %v1455_v29 }
 0x40b   : > { %v1417_v27 = vpop.permute.xlu1 %1416 }
 0x40c   : > { %v1414_v62 = vpop.permute.xlu0 %1413  ;;  %v1446_v53 = vperm.slane %v1417_v27, %v3929_v45 }
 0x40d   : > { %v1445_v44 = vperm.slane %v1414_v62, %v3922_v5  ;;  %v1457_v62 = vsel %vm880_vm4, %v1444_v22, %v1456_v9 }
 0x40f   : > { %v1447_v26 = vsel %vm1266_vm9, %v1446_v53, %v1445_v44 }
 0x410   : > { %v1458_v24 = vsel %vm882_vm5, %v1447_v26, %v1457_v62 }
 0x413   : > { %v1426_v30 = vpop.permute.xlu1 %1425 }
 0x414   : > { %v1423_v35 = vpop.permute.xlu0 %1422  ;;  %v1451_v63 = vperm.slane %v1426_v30, %v3922_v5 }
 0x415   : > { %v1449_v34 = vperm.slane %v1423_v35, %v3929_v45 }
 0x417   : > { %v1450_v29 = vsel %vm1266_vm9, %v1449_v34, %v1448_v17 }
 0x418   : > { %v1459_v53 = vsel %vm884_vm6, %v1450_v29, %v1458_v24 }
 0x420   : > { %v1892_v40 = vpop.permute.xlu2 %1891 }
 0x421   : > { %v1938_v30 = vperm.slane %v1892_v40, %v3922_v5 }
 0x428   : > { %v1901_v41 = vpop.permute.xlu2 %1900 }
 0x429   : > { %v1942_v34 = vperm.slane %v1901_v41, %v3929_v45 }
 0x430   : > { %v1907_v46 = vpop.permute.xlu2 %1906 }
 0x436   : > { %v1898_v52 = vpop.permute.xlu1 %1897 }
 0x437   : > { %v1895_v42 = vpop.permute.xlu0 %1894  ;;  %v1941_v35 = vperm.slane %v1898_v52, %v3922_v5  ;;  %v1945_v52 = vperm.slane %v1907_v46, %v3929_v45 }
 0x438   : > { %v1913_v54 = vpop.permute.xlu2 %1912  ;;  %v1939_v14 = vperm.slane %v1895_v42, %v3929_v45 }
 0x439   : > { %v1943_v26 = vsel %vm1266_vm9, %v1942_v34, %v1941_v35  ;;  %v1948_v29 = vperm.slane %v1913_v54, %v3929_v45 }
 0x43e   : > { %v1904_v15 = vpop.permute.xlu1 %1903 }
 0x43f   : > { %v1916_v60 = vpop.permute.xlu0 %1915  ;;  %v1944_v44 = vperm.slane %v1904_v15, %v3922_v5  ;;  %v1940_v15 = vsel %vm1266_vm9, %v1939_v14, %v1938_v30 }
 0x440   : > { %v1922_v12 = vpop.permute.xlu2 %1921  ;;  %v1950_v41 = vperm.slane %v1916_v60, %v3922_v5 }
 0x441   : > { %v1946_v40 = vsel %vm1266_vm9, %v1945_v52, %v1944_v44  ;;  %v1953_v35 = vperm.slane %v1922_v12, %v3922_v5 }
 0x446   : > { %v1910_v49 = vpop.permute.xlu1 %1909 }
 0x447   : > { %v1925_v6 = vpop.permute.xlu0 %1924  ;;  %v1947_v9 = vperm.slane %v1910_v49, %v3922_v5 }
 0x448   : > { %v1931_v7 = vpop.permute.xlu2 %1930 }
 0x449   : > { %v1949_v49 = vsel %vm1266_vm9, %v1948_v29, %v1947_v9  ;;  %v1957_v54 = vperm.slane %v1931_v7, %v3929_v45 }
 0x44e   : > { %v1919_v51 = vpop.permute.xlu1 %1918 }
 0x44f   : > { %v1951_v42 = vperm.slane %v1919_v51, %v3929_v45  ;;  %v1934_v24 = vpop.permute.xlu0 %1933 }
 0x450   : > { %v1429_v57 = vpop.permute.xlu2 %1428  ;;  %v1959_v44 = vperm.slane %v1934_v24, %v3922_v5 }
 0x451   : > { %v1452_v27 = vperm.slane %v1429_v57, %v3929_v45  ;;  %v1962_v57 = vsel %vm874_vm1, %v1943_v26, %v1940_v15  ;;  %v1952_v46 = vsel %vm1266_vm9, %v1951_v42, %v1950_v41 }
 0x453   : > { %v1453_v59 = vsel %vm1266_vm9, %v1452_v27, %v1451_v63  ;;  %v1963_v63 = vsel %vm876_vm2, %v1946_v40, %v1962_v57  ;;  %v1954_v27 = vperm.slane %v1925_v6, %v3929_v45 }
 0x454   : > { %v1460_v16 = vsel %vm886_vm7, %v1453_v59, %v1459_v53  ;;  %v1964_v62 = vsel %vm878_vm3, %v1949_v49, %v1963_v63 }
 0x455   : > { %v1462_v17 = vsel %vm1297_vm10, %v1460_v16, 0.0  ;;  %v1965_v60 = vsel %vm880_vm4, %v1952_v46, %v1964_v62  ;;  %v1955_v53 = vsel %vm1266_vm9, %v1954_v27, %v1953_v35 }
 0x456   : > { %1463 = vadd.xlane.f32.xlu1 %v1462_v17  ;;  %v1928_v22 = vpop.permute.xlu1 %1927  ;;  %v1966_v6 = vsel %vm882_vm5, %v1955_v53, %v1965_v60 }
 0x457   : > { %v1956_v51 = vperm.slane %v1928_v22, %v3922_v5 }
 0x459   : > { %v1958_v14 = vsel %vm1266_vm9, %v1957_v54, %v1956_v51 }
 0x45a   : > { %v1967_v7 = vsel %vm884_vm6, %v1958_v14, %v1966_v6 }
 0x45e   : > { %v1937_v59 = vpop.permute.xlu1 %1936 }
 0x45f   : > { %v1960_v16 = vperm.slane %v1937_v59, %v3929_v45 }
 0x461   : > { %v1961_v30 = vsel %vm1266_vm9, %v1960_v16, %v1959_v44 }
 0x462   : > { %v1968_v34 = vsel %vm886_vm7, %v1961_v30, %v1967_v7 }
 0x463   : > { %v1970_v12 = vsel %vm1297_vm10, %v1968_v34, 0.0 }
 0x464   : > { %1971 = vadd.xlane.f32.xlu0 %v1970_v12 }
 0x4c9   : > { %v1464_v9 = vpop.xlane.xlu1 %1463 }
 0x4ca   : > { %3119 = vrcp.f32 %v1464_v9 }
 0x4d0   : > { %v3120_v17 = vpop.eup %3119 }
 0x4d1   : > { %v1466_v52 = vmul.f32 %v3120_v17, %v1464_v9 }
 0x4d3   : > { %v1467_v42 = vsub.f32 2.0, %v1466_v52  ;;  %v4332_v52 = vld [vmem:[%s3540_s25] sm:$0xff] }
 0x4d5   : > { %v4289_v22 = vmul.f32 %v3120_v17, %v1467_v42  ;;  %v4336_v42 = vld [vmem:[%s3540_s25 + $0x18] sm:$0xff] }
 0x4d7   : > { %v1972_v5 = vpop.xlane.xlu0 %1971  ;;  %v1471_v45 = vperm.slane %v4289_v22, 1  ;;  %v1470_v26 = vperm.slane %v4289_v22, 0  ;;  %v1472_v41 = vperm.slane %v4289_v22, 2 }
 0x4d8   : > { %3121 = vrcp.f32 %v1972_v5 }
 0x4d9   : > { %v1488_v15 = vmul.f32 %v4086_v48, %v1471_v45  ;;  %v1487_v29 = vmul.f32 %v4088_v31, %v1470_v26  ;;  %v1486_v40 = vmul.f32 %v4091_v1, %v1470_v26  ;;  %v1491_v46 = vmul.f32 %v4099_v37, %v1472_v41 }
 0x4da   : > { %v1490_v51 = vmul.f32 %v4101_v18, %v1472_v41  ;;  %v1489_v63 = vmul.f32 %v4104_v20, %v1471_v45  ;;  %v1474_v31 = vperm.slane %v4289_v22, 4  ;;  %v1473_v1 = vperm.slane %v4289_v22, 3 }
 0x4db   : > { %1514 = vperm.xlu0 %3051, %v1488_v15   ;;  %1509 = vperm.xlu1 %3052, %v1487_v29  }
 0x4dc   : > { %1504 = vperm.xlu2 %3050, %v1486_v40   ;;  %v1494_v62 = vmul.f32 %v4113_v13, %v1474_v31  ;;  %v1493_v54 = vmul.f32 %v4115_v11, %v1473_v1  ;;  %v1492_v24 = vmul.f32 %v4118_v58, %v1473_v1  ;;  %v1495_v12 = vmul.f32 %v4132_v3, %v1474_v31 }
 0x4de   : > { %v3122_v49 = vpop.eup %3121 }
 0x4df   : > { %v1974_v57 = vmul.f32 %v3122_v49, %v1972_v5  ;;  %v4340_v5 = vld [vmem:[%s3540_s25 + $0x10] sm:$0xff] }
 0x4e1   : > { %v1975_v48 = vsub.f32 2.0, %v1974_v57 }
 0x4e3   : > { %1529 = vperm.xlu0 %3051, %v1491_v46   ;;  %1524 = vperm.xlu1 %3052, %v1490_v51   ;;  %v1976_v27 = vmul.f32 %v3122_v49, %v1975_v48 }
 0x4e4   : > { %1519 = vperm.xlu2 %3050, %v1489_v63  }
 0x4e5   : > { %v1980_v37 = vperm.slane %v1976_v27, 2  ;;  %v1981_v18 = vperm.slane %v1976_v27, 3  ;;  %v1978_v20 = vperm.slane %v1976_v27, 0  ;;  %v1982_v13 = vperm.slane %v1976_v27, 4 }
 0x4e6   : > { %v1983_v59 = vperm.slane %v1976_v27, 5  ;;  %v1984_v44 = vperm.slane %v1976_v27, 6  ;;  %v1979_v16 = vperm.slane %v1976_v27, 1 }
 0x4e7   : > { %v1999_v35 = vmul.f32 %v4190_v4, %v1980_v37  ;;  %v2000_v60 = vmul.f32 %v4185_v21, %v1981_v18  ;;  %v1994_v14 = vmul.f32 %v4164_v50, %v1978_v20  ;;  %v2003_v11 = vmul.f32 %v4196_v56, %v1982_v13 }
 0x4e8   : > { %v2005_v58 = vmul.f32 %v4187_v43, %v1983_v59  ;;  %v1995_v53 = vmul.f32 %v4161_v33, %v1978_v20  ;;  %v1985_v4 = vperm.slane %v1976_v27, 7  ;;  %v2006_v21 = vmul.f32 %v4207_v36, %v1984_v44 }
 0x4e9   : > { %v1996_v6 = vmul.f32 %v4159_v61, %v1979_v16  ;;  %v1475_v56 = vperm.slane %v4289_v22, 5  ;;  %v1997_v30 = vmul.f32 %v4177_v23, %v1979_v16  ;;  %v1476_v36 = vperm.slane %v4289_v22, 6 }
 0x4ea   : > { %v2008_v50 = vmul.f32 %v4198_v0, %v1985_v4  ;;  %v2009_v43 = vmul.f32 %v4216_v32, %v1985_v4  ;;  %v1998_v7 = vmul.f32 %v4172_v28, %v1980_v37  ;;  %v1477_v32 = vperm.slane %v4289_v22, 7  ;;  %v3133_v4 = vld [vmem:[%s3540_s25 + $0x30] sm:$0xff] }
 0x4eb   : > { %1544 = vperm.xlu0 %3051, %v1494_v62   ;;  %1539 = vperm.xlu1 %3052, %v1493_v54   ;;  %v1496_v33 = vmul.f32 %v4129_v25, %v1475_v56  ;;  %v1497_v0 = vmul.f32 %v4127_v19, %v1475_v56  ;;  %v1499_v61 = vmul.f32 %v4138_v8, %v1476_v36  ;;  %v3131_v62 = vld [vmem:[%s3540_s25 + $0x28] sm:$0xff] }
 0x4ec   : > { %1534 = vperm.xlu2 %3050, %v1492_v24   ;;  %v1500_v25 = vmul.f32 %v4136_v10, %v1477_v32  ;;  %v2001_v23 = vmul.f32 %v4201_v55, %v1981_v18  ;;  %v2002_v34 = vmul.f32 %v4174_v2, %v1982_v13  ;;  %v2004_v19 = vmul.f32 %v4210_v39, %v1983_v59  ;;  %v4640_v2 = vld [vmem:[#allocation16_spill] sm:$0xff] }
 0x4ed   : > { %v2007_v8 = vmul.f32 %v4219_v38, %v1984_v44  ;;  %v1498_v55 = vmul.f32 %v4141_v47, %v1476_v36  ;;  %v1501_v17 = vmul.f32 %v4640_v2, %v1477_v32  ;;  %v4344_v47 = vld [vmem:[%s3540_s25 + $0x8] sm:$0xff]  ;;  %v3132_v24 = vld [vmem:[%s3540_s25 + $0x20] sm:$0xff] }
 0x4f3   : > { %2037 = vperm.xlu0 %3051, %v1999_v35   ;;  %2042 = vperm.xlu1 %3052, %v2000_v60  }
 0x4f4   : > { %2012 = vperm.xlu2 %3050, %v1994_v14  }
 0x4fb   : > { %2057 = vperm.xlu0 %3051, %v2003_v11   ;;  %2067 = vperm.xlu1 %3052, %v2005_v58  }
 0x4fc   : > { %2017 = vperm.xlu2 %3050, %v1995_v53  }
 0x503   : > { %2072 = vperm.xlu0 %3051, %v2006_v21   ;;  %2082 = vperm.xlu1 %3052, %v2008_v50  }
 0x504   : > { %2022 = vperm.xlu2 %3050, %v1996_v6  }
 0x50b   : > { %2087 = vperm.xlu0 %3051, %v2009_v43   ;;  %1554 = vperm.xlu1 %3052, %v1496_v33   ;;  %v3134_v33 = vld [vmem:[%s3540_s25 + $0x38] sm:$0xff] }
 0x50c   : > { %2027 = vperm.xlu2 %3050, %v1997_v30  }
 0x513   : > { %1559 = vperm.xlu0 %3051, %v1497_v0   ;;  %1569 = vperm.xlu1 %3052, %v1499_v61  }
 0x514   : > { %2032 = vperm.xlu2 %3050, %v1998_v7  }
 0x51b   : > { %1574 = vperm.xlu0 %3051, %v1500_v25  }
 0x51c   : > { %2047 = vperm.xlu2 %3050, %v2001_v23  }
 0x524   : > { %2052 = vperm.xlu2 %3050, %v2002_v34  }
 0x52c   : > { %2062 = vperm.xlu2 %3050, %v2004_v19  }
 0x534   : > { %2077 = vperm.xlu2 %3050, %v2007_v8  }
 0x536   : > { %v1505_v28 = vpop.permute.xlu2 %1504 }
 0x537   : > { %v1582_v39 = vmul.f32 %v4332_v52, %v1505_v28 }
 0x539   : > { %v1598_v29 = vsel %vm601_vm0, %v1582_v39, 0.0 }
 0x53c   : > { %1549 = vperm.xlu2 %3050, %v1495_v12  }
 0x53e   : > { %v1520_v10 = vpop.permute.xlu2 %1519 }
 0x53f   : > { %v1585_v38 = vmul.f32 %v4336_v42, %v1520_v10 }
 0x541   : > { %v1608_v40 = vsel %vm601_vm0, %v1585_v38, 0.0 }
 0x544   : > { %1564 = vperm.xlu2 %3050, %v1498_v55  }
 0x546   : > { %v1535_v9 = vpop.permute.xlu2 %1534 }
 0x547   : > { %v1588_v16 = vmul.f32 %v3133_v4, %v1535_v9 }
 0x549   : > { %v1625_v7 = vsel %vm601_vm0, %v1588_v16, 0.0  ;;  %v2185_v16 = vld [vmem:[#allocation9 + $0x18] sm:$0xff] }
 0x54c   : > { %1579 = vperm.xlu2 %3050, %v1501_v17  }
 0x54d   : > { %v1515_v22 = vpop.permute.xlu0 %1514  ;;  %v1510_v3 = vpop.permute.xlu1 %1509 }
 0x54e   : > { %v1584_v45 = vmul.f32 %v4340_v5, %v1515_v22  ;;  %v1583_v26 = vmul.f32 %v4344_v47, %v1510_v3  ;;  %v4347_v15 = vpop.permute.xlu2 %2012 }
 0x550   : > { %v1607_v41 = vsel %vm601_vm0, %v1584_v45, 0.0  ;;  %v1599_v49 = vsel %vm601_vm0, %v1583_v26, 0.0 }
 0x551   : > { %v1609_v57 = vadd.f32 %v1608_v40, %v1607_v41  ;;  %v1600_v46 = vadd.f32 %v1599_v49, %v1598_v29 }
 0x553   : > { %v1610_v51 = vrot.slane %v1609_v57, 4  ;;  %v1601_v63 = vrot.slane %v1600_v46, 4 }
 0x555   : > { %v1611_v48 = vadd.f32 %v1610_v51, %v1609_v57  ;;  %v1602_v31 = vadd.f32 %v1601_v63, %v1600_v46  ;;  %v1530_v1 = vpop.permute.xlu0 %1529  ;;  %v1525_v27 = vpop.permute.xlu1 %1524  ;;  %v2090_v57 = vmul.f32 %v4332_v52, %v4347_v15 }
 0x556   : > { %v1587_v54 = vmul.f32 %v3131_v62, %v1530_v1  ;;  %v1586_v37 = vmul.f32 %v3132_v24, %v1525_v27  ;;  %v2018_v18 = vpop.permute.xlu2 %2017 }
 0x557   : > { %v1612_v20 = vrot.slane %v1611_v48, 2  ;;  %v1603_v35 = vrot.slane %v1602_v31, 2  ;;  %v2091_v40 = vmul.f32 %v4344_v47, %v2018_v18  ;;  %v2106_v47 = vsel %vm601_vm0, %v2090_v57, 0.0  ;;  %v4382_v18 = vld [vmem:[%s3540_s25 + $0x48] sm:$0xff] }
 0x558   : > { %v1617_v60 = vsel %vm601_vm0, %v1587_v54, 0.0  ;;  %v1616_v14 = vsel %vm601_vm0, %v1586_v37, 0.0 }
 0x559   : > { %v1613_v13 = vadd.f32 %v1612_v20, %v1611_v48  ;;  %v1604_v59 = vadd.f32 %v1603_v35, %v1602_v31  ;;  %v1618_v11 = vadd.f32 %v1617_v60, %v1616_v14  ;;  %v2107_v31 = vsel %vm601_vm0, %v2091_v40, 0.0 }
 0x55a   : > { %v2108_v27 = vadd.f32 %v2107_v31, %v2106_v47 }
 0x55b   : > { %v1614_v58 = vrot.slane %v1613_v13, 1  ;;  %v1605_v53 = vrot.slane %v1604_v59, 1  ;;  %v1619_v44 = vrot.slane %v1618_v11, 4 }
 0x55c   : > { %v2109_v14 = vrot.slane %v2108_v27, 4 }
 0x55d   : > { %v1615_v21 = vadd.f32 %v1614_v58, %v1613_v13  ;;  %v1606_v50 = vadd.f32 %v1605_v53, %v1604_v59  ;;  %v1620_v6 = vadd.f32 %v1619_v44, %v1618_v11  ;;  %v4358_v56 = vpop.permute.xlu0 %1544  ;;  %v1540_v43 = vpop.permute.xlu1 %1539  ;;  %v4387_v13 = vld [vmem:[%s3540_s25 + $0x78] sm:$0xff]  ;;  %v4392_v44 = vld [vmem:[%s3540_s25 + $0x40] sm:$0xff] }
 0x55e   : > { %v1589_v30 = vmul.f32 %v3134_v33, %v1540_v43  ;;  %v2023_v36 = vpop.permute.xlu2 %2022 }
 0x55f   : > { %v2396_v0 = vsel %vm874_vm1, %v1615_v21, %v1606_v50  ;;  %v1621_v61 = vrot.slane %v1620_v6, 2  ;;  %v2092_v29 = vmul.f32 %v4340_v5, %v2023_v36  ;;  %v4396_v21 = vld [vmem:[%s3540_s25 + $0x70] sm:$0xff]  ;;  %v4401_v36 = vand.u32 4294901760, %v2185_v16 }
 0x560   : > { %v1626_v32 = vsel %vm601_vm0, %v1589_v30, 0.0 }
 0x561   : > { %v1627_v25 = vadd.f32 %v1626_v32, %v1625_v7  ;;  %v1622_v23 = vadd.f32 %v1621_v61, %v1620_v6  ;;  %v2115_v51 = vsel %vm601_vm0, %v2092_v29, 0.0  ;;  %v2110_v61 = vadd.f32 %v2109_v14, %v2108_v27  ;;  %2376 = vmatpush.msra.mxu1 %v4401_v36  ;;  %2216 = vmatpush.msrb.mxu2 %v4401_v36  ;;  %v3140_v29 = vld [vmem:[%s3540_s25 + $0x50] sm:$0xff] }
 0x563   : > { %v1628_v34 = vrot.slane %v1627_v25, 4  ;;  %v1623_v28 = vrot.slane %v1622_v23, 1 }
 0x565   : > { %v1629_v19 = vadd.f32 %v1628_v34, %v1627_v25  ;;  %v2038_v8 = vpop.permute.xlu0 %2037  ;;  %v2043_v9 = vpop.permute.xlu1 %2042  ;;  %v1624_v2 = vadd.f32 %v1623_v28, %v1622_v23  ;;  %v4407_v34 = vsub.f32 %v2185_v16, %v4401_v36 }
 0x566   : > { %v2028_v12 = vpop.permute.xlu2 %2027  ;;  %v2095_v5 = vmul.f32 %v3131_v62, %v2038_v8  ;;  %v2096_v37 = vmul.f32 %v3133_v4, %v2043_v9  ;;  %v4412_v8 = vld [vmem:[%s3540_s25 + $0x58] sm:$0xff] }
 0x567   : > { %v1630_v10 = vrot.slane %v1629_v19, 2  ;;  %v2397_v22 = vsel %vm876_vm2, %v1624_v2, %v2396_v0  ;;  %v2093_v26 = vmul.f32 %v4336_v42, %v2028_v12  ;;  %v2184_v0 = vld [vmem:[#allocation9 + $0x10] sm:$0xff] }
 0x568   : > { %v2125_v15 = vsel %vm601_vm0, %v2095_v5, 0.0  ;;  %v2133_v58 = vsel %vm601_vm0, %v2096_v37, 0.0  ;;  %v4404_v25 = vand.u32 4294901760, %v2184_v0 }
 0x569   : > { %v1631_v55 = vadd.f32 %v1630_v10, %v1629_v19  ;;  %v2116_v49 = vsel %vm601_vm0, %v2093_v26, 0.0  ;;  %v2183_v19 = vld [vmem:[#allocation9 + $0x8] sm:$0xff] }
 0x56a   : > { %v2117_v42 = vadd.f32 %v2116_v49, %v2115_v51  ;;  %2378 = vmatpush.msra.mxu1 %v4404_v25  ;;  %2218 = vmatpush.msrb.mxu2 %v4404_v25 }
 0x56b   : > { %v1632_v17 = vrot.slane %v1631_v55, 1 }
 0x56c   : > { %v2118_v52 = vrot.slane %v2117_v42, 4 }
 0x56d   : > { %v1633_v39 = vadd.f32 %v1632_v17, %v1631_v55  ;;  %v2058_v38 = vpop.permute.xlu0 %2057  ;;  %v2068_v41 = vpop.permute.xlu1 %2067  ;;  %v4417_v55 = vsub.f32 %v2184_v0, %v4404_v25  ;;  %v2246_v17 = vand.u32 4294901760, %v4407_v34 }
 0x56e   : > { %v2033_v3 = vpop.permute.xlu2 %2032  ;;  %v2119_v53 = vadd.f32 %v2118_v52, %v2117_v42  ;;  %v2101_v28 = vmul.f32 %v4412_v8, %v2068_v41 }
 0x56f   : > { %v4366_v45 = vsel %vm878_vm3, %v1633_v39, %v2397_v22  ;;  %v2094_v63 = vmul.f32 %v3132_v24, %v2033_v3  ;;  %v2099_v24 = vmul.f32 %v4382_v18, %v2058_v38  ;;  %v4421_v39 = vand.u32 4294901760, %v2183_v19  ;;  %2345 = vmatpush.msra.mxu0 %v2246_v17 }
 0x570   : > { %v2120_v23 = vrot.slane %v2119_v53, 2  ;;  %v2111_v38 = vrot.slane %v2110_v61, 2  ;;  %v2247_v41 = vsub.f32 %v4407_v34, %v2246_v17  ;;  %v2252_v49 = vand.u32 4294901760, %v4417_v55 }
 0x571   : > { %v2124_v54 = vsel %vm601_vm0, %v2094_v63, 0.0  ;;  %v2143_v43 = vsel %vm601_vm0, %v2099_v24, 0.0  ;;  %2380 = vmatpush.msra.mxu1 %v4421_v39  ;;  %v2152_v57 = vsel %vm601_vm0, %v2101_v28, 0.0  ;;  %v2182_v63 = vld [vmem:[#allocation9] sm:$0xff]  ;;  %2220 = vmatpush.msrb.mxu2 %v4421_v39 }
 0x572   : > { %v2126_v20 = vadd.f32 %v2125_v15, %v2124_v54  ;;  %v2121_v26 = vadd.f32 %v2120_v23, %v2119_v53  ;;  %v2248_v5 = vand.u32 4294901760, %v2247_v41  ;;  %2349 = vmatpush.msra.mxu0 %v2252_v49  ;;  %v2253_v27 = vsub.f32 %v4417_v55, %v2252_v49  ;;  %v4434_v15 = vld [vmem:[%s3540_s25 + $0x60] sm:$0xff] }
 0x573   : > { %v2257_v54 = vsub.f32 %v2183_v19, %v4421_v39  ;;  %v2112_v37 = vadd.f32 %v2111_v38, %v2110_v61  ;;  %v1590_v53 = vmul.f32 %v4392_v44, %v4358_v56 }
 0x574   : > { %v2122_v52 = vrot.slane %v2121_v26, 1  ;;  %2249 = vmatpush.msrb.mxu3 %v2248_v5  ;;  %v2179_v5 = vld [vmem:[%s4601_s4 + $0x8] sm:$0xff] }
 0x575   : > { %v4374_v46 = vpop.permute.xlu0 %2072  ;;  %v2083_v35 = vpop.permute.xlu1 %2082  ;;  %v2258_v14 = vand.u32 4294901760, %v2257_v54  ;;  %v1634_v41 = vsel %vm601_vm0, %v1590_v53, 0.0 }
 0x576   : > { %v2048_v48 = vpop.permute.xlu2 %2047  ;;  %v2104_v50 = vmul.f32 %v4396_v21, %v2083_v35  ;;  %v2102_v24 = vmul.f32 %v4434_v15, %v4374_v46 }
 0x577   : > { %v2097_v1 = vmul.f32 %v3134_v33, %v2048_v48  ;;  %v2127_v33 = vrot.slane %v2126_v20, 4  ;;  %2353 = vmatpush.msra.mxu0 %v2258_v14 }
 0x578   : > { %v2169_v12 = vsel %vm601_vm0, %v2104_v50, 0.0  ;;  %v2259_v50 = vsub.f32 %v2257_v54, %v2258_v14 }
 0x579   : > { %v2134_v62 = vsel %vm601_vm0, %v2097_v1, 0.0  ;;  %v2128_v9 = vadd.f32 %v2127_v33, %v2126_v20  ;;  %v4438_v20 = vand.u32 4294901760, %v2182_v63 }
 0x57a   : > { %v2135_v6 = vadd.f32 %v2134_v62, %v2133_v58 }
 0x57b   : > { %v2129_v48 = vrot.slane %v2128_v9, 2  ;;  %v2263_v58 = vsub.f32 %v2182_v63, %v4438_v20  ;;  %2382 = vmatpush.msra.mxu1 %v4438_v20  ;;  %2222 = vmatpush.msrb.mxu2 %v4438_v20 }
 0x57c   : > { %v2136_v10 = vrot.slane %v2135_v6, 4 }
 0x57d   : > { %v2088_v60 = vpop.permute.xlu0 %2087  ;;  %v1555_v33 = vpop.permute.xlu1 %1554  ;;  %v2264_v61 = vand.u32 4294901760, %v2263_v58  ;;  %2287 = vmatpush.msra.mxu2 %v4407_v34 }
 0x57e   : > { %v2105_v59 = vmul.f32 %v4387_v13, %v2088_v60  ;;  %v2053_v11 = vpop.permute.xlu2 %2052  ;;  %v2137_v51 = vadd.f32 %v2136_v10, %v2135_v6  ;;  %v2254_v60 = vand.u32 4294901760, %v2253_v27  ;;  %v2113_v6 = vrot.slane %v2112_v37, 1 }
 0x57f   : > { %v2098_v4 = vmul.f32 %v4392_v44, %v2053_v11  ;;  %v2260_v44 = vand.u32 4294901760, %v2259_v50  ;;  %v2265_v10 = vsub.f32 %v2263_v58, %v2264_v61  ;;  %2357 = vmatpush.msra.mxu0 %v2264_v61  ;;  %2290 = vmatpush.msra.mxu2 %v4417_v55 }
 0x580   : > { %v2170_v7 = vsel %vm601_vm0, %v2105_v59, 0.0  ;;  %v2138_v35 = vrot.slane %v2137_v51, 2  ;;  %v2130_v59 = vadd.f32 %v2129_v48, %v2128_v9  ;;  %2255 = vmatpush.msrb.mxu3 %v2254_v60  ;;  %v1592_v9 = vmul.f32 %v3140_v29, %v1555_v33 }
 0x581   : > { %v2142_v30 = vsel %vm601_vm0, %v2098_v4, 0.0  ;;  %v2171_v2 = vadd.f32 %v2170_v7, %v2169_v12  ;;  %v2160_v7 = vsel %vm601_vm0, %v2102_v24, 0.0  ;;  %v2114_v34 = vadd.f32 %v2113_v6, %v2112_v37  ;;  %2293 = vmatpush.msra.mxu2 %v2257_v54 }
 0x582   : > { %v2144_v32 = vadd.f32 %v2143_v43, %v2142_v30  ;;  %v2123_v43 = vadd.f32 %v2122_v52, %v2121_v26  ;;  %v4446_v30 = vld [vmem:[%s3540_s25 + $0x68] sm:$0xff]  ;;  %v2131_v23 = vrot.slane %v2130_v59, 1  ;;  %2261 = vmatpush.msrb.mxu3 %v2260_v44  ;;  %v1643_v55 = vsel %vm601_vm0, %v1592_v9, 0.0 }
 0x583   : > { %v2172_v31 = vrot.slane %v2171_v2, 4  ;;  %2296 = vmatpush.msra.mxu2 %v2263_v58  ;;  %v4472_v54 = vand.u32 4294901760, %v2179_v5 }
 0x584   : > { %v2145_v22 = vrot.slane %v2144_v32, 4  ;;  %v2194_v49 = vsel %vm874_vm1, %v2123_v43, %v2114_v34 }
 0x585   : > { %v2173_v11 = vadd.f32 %v2172_v31, %v2171_v2  ;;  %v1560_v28 = vpop.permute.xlu0 %1559 }
 0x586   : > { %v2063_v3 = vpop.permute.xlu2 %2062  ;;  %v2146_v47 = vadd.f32 %v2145_v22, %v2144_v32  ;;  %v2139_v32 = vadd.f32 %v2138_v35, %v2137_v51  ;;  %v2266_v22 = vand.u32 4294901760, %v2265_v10  ;;  %v1593_v26 = vmul.f32 %v4412_v8, %v1560_v28  ;;  %v2181_v8 = vld [vmem:[%s4601_s4 + $0x18] sm:$0xff] }
 0x587   : > { %v2100_v40 = vmul.f32 %v3140_v29, %v2063_v3  ;;  %v2174_v19 = vrot.slane %v2173_v11, 2 }
 0x588   : > { %v2147_v46 = vrot.slane %v2146_v47, 2  ;;  %v2140_v3 = vrot.slane %v2139_v32, 1  ;;  %2267 = vmatpush.msrb.mxu3 %v2266_v22  ;;  %v1644_v52 = vsel %vm601_vm0, %v1593_v26, 0.0 }
 0x589   : > { %v2151_v42 = vsel %vm601_vm0, %v2100_v40, 0.0  ;;  %v2175_v51 = vadd.f32 %v2174_v19, %v2173_v11  ;;  %v1570_v11 = vpop.permute.xlu1 %1569 }
 0x58a   : > { %v2153_v1 = vadd.f32 %v2152_v57, %v2151_v42  ;;  %v2148_v2 = vadd.f32 %v2147_v46, %v2146_v47  ;;  %v2132_v57 = vadd.f32 %v2131_v23, %v2130_v59  ;;  %2316 = vmatpush.msra.mxu3 %v4401_v36  ;;  %v2180_v42 = vld [vmem:[%s4601_s4 + $0x10] sm:$0xff]  ;;  %v2178_v36 = vld [vmem:[%s4601_s4] sm:$0xff]  ;;  %v2141_v37 = vadd.f32 %v2140_v3, %v2139_v32 }
 0x58b   : > { %v4470_v27 = vand.u32 4294901760, %v2180_v42  ;;  %v4479_v35 = vand.u32 4294901760, %v2178_v36 }
 0x58c   : > { %v2154_v62 = vrot.slane %v2153_v1, 4  ;;  %v2149_v29 = vrot.slane %v2148_v2, 1  ;;  %2318 = vmatpush.msra.mxu3 %v4404_v25  ;;  %v4491_v25 = vsub.f32 %v2179_v5, %v4472_v54  ;;  %v2195_v46 = vsel %vm876_vm2, %v2132_v57, %v2194_v49 }
 0x58d   : > { %v4486_v14 = vsub.f32 %v2180_v42, %v4470_v27  ;;  %v1575_v34 = vpop.permute.xlu0 %1574 }
 0x58e   : > { %v2155_v4 = vadd.f32 %v2154_v62, %v2153_v1  ;;  %v2078_v16 = vpop.permute.xlu2 %2077  ;;  %v4468_v1 = vand.u32 4294901760, %v2181_v8  ;;  %v2176_v62 = vrot.slane %v2175_v51, 1  ;;  %v2150_v59 = vadd.f32 %v2149_v29, %v2148_v2  ;;  %2320 = vmatpush.msra.mxu3 %v4421_v39 }
 0x58f   : > { %v2103_v0 = vmul.f32 %v4446_v30, %v2078_v16  ;;  %v2454_v33 = vand.u32 4294901760, %v4486_v14  ;;  %v4500_v39 = vsub.f32 %v2178_v36, %v4479_v35  ;;  %v2460_v23 = vand.u32 4294901760, %v4491_v25 }
 0x590   : > { %v2156_v56 = vrot.slane %v2155_v4, 2  ;;  %v4483_v60 = vsub.f32 %v2181_v8, %v4468_v1  ;;  %2518 = vmatpush.msrb.mxu1 %v4468_v1  ;;  %2322 = vmatpush.msra.mxu3 %v4438_v20  ;;  %v2177_v61 = vadd.f32 %v2176_v62, %v2175_v51 }
 0x591   : > { %v2161_v12 = vsel %vm601_vm0, %v2103_v0, 0.0  ;;  %v2196_v0 = vsel %vm878_vm3, %v2141_v37, %v2195_v46  ;;  %v2455_v9 = vsub.f32 %v4486_v14, %v2454_v33  ;;  %v2466_v2 = vand.u32 4294901760, %v4500_v39 }
 0x592   : > { %v2157_v17 = vadd.f32 %v2156_v56, %v2155_v4  ;;  %v2162_v38 = vadd.f32 %v2161_v12, %v2160_v7  ;;  %v1645_v4 = vadd.f32 %v1644_v52, %v1643_v55  ;;  %v2448_v50 = vand.u32 4294901760, %v4483_v60  ;;  %2489 = vmatpush.msrb.mxu0 %v4483_v60  ;;  %2520 = vmatpush.msrb.mxu1 %v4470_v27 }
 0x593   : > { %v1595_v7 = vmul.f32 %v4446_v30, %v1570_v11  ;;  %v2197_v32 = vsel %vm880_vm4, %v2150_v59, %v2196_v0  ;;  %v2456_v55 = vand.u32 4294901760, %v2455_v9  ;;  %v2467_v29 = vsub.f32 %v4500_v39, %v2466_v2 }
 0x594   : > { %v2163_v40 = vrot.slane %v2162_v38, 4  ;;  %v2158_v63 = vrot.slane %v2157_v17, 1  ;;  %2492 = vmatpush.msrb.mxu0 %v4486_v14  ;;  %2522 = vmatpush.msrb.mxu1 %v4472_v54  ;;  %v2449_v20 = vsub.f32 %v4483_v60, %v2448_v50  ;;  %v1646_v30 = vrot.slane %v1645_v4, 4 }
 0x596   : > { %v2164_v48 = vadd.f32 %v2163_v40, %v2162_v38  ;;  %v1550_v31 = vpop.permute.xlu2 %1549  ;;  %v2159_v16 = vadd.f32 %v2158_v63, %v2157_v17  ;;  %2495 = vmatpush.msrb.mxu0 %v4491_v25  ;;  %2524 = vmatpush.msrb.mxu1 %v4479_v35  ;;  %v1653_v17 = vsel %vm601_vm0, %v1595_v7, 0.0  ;;  %v2450_v26 = vand.u32 4294901760, %v2449_v20 }
 0x597   : > { %v1591_v47 = vmul.f32 %v4382_v18, %v1550_v31  ;;  %v2461_v40 = vsub.f32 %v4491_v25, %v2460_v23  ;;  %v1647_v57 = vadd.f32 %v1646_v30, %v1645_v4  ;;  %v1596_v63 = vmul.f32 %v4396_v21, %v1575_v34  ;;  %v2599_v25 = vld [vmem:[%s4604_s7 + $0x18] sm:$0xff] }
 0x598   : > { %v2165_v24 = vrot.slane %v2164_v48, 2  ;;  %v2198_v12 = vsel %vm882_vm5, %v2159_v16, %v2197_v32  ;;  %2498 = vmatpush.msrb.mxu0 %v4500_v39  ;;  %v2598_v39 = vld [vmem:[%s4604_s7 + $0x10] sm:$0xff] }
 0x599   : > { %v1635_v18 = vsel %vm601_vm0, %v1591_v47, 0.0  ;;  %v2462_v42 = vand.u32 4294901760, %v2461_v40  ;;  %v1648_v37 = vrot.slane %v1647_v57, 2  ;;  %v1661_v62 = vsel %vm601_vm0, %v1596_v63, 0.0 }
 0x59a   : > { %v2166_v58 = vadd.f32 %v2165_v24, %v2164_v48  ;;  %v1636_v53 = vadd.f32 %v1635_v18, %v1634_v41  ;;  %v2468_v24 = vand.u32 4294901760, %v2467_v29  ;;  %v2621_v9 = vand.u32 4294901760, %v2598_v39 }
 0x59b   : > { %v1649_v46 = vadd.f32 %v1648_v37, %v1647_v57 }
 0x59c   : > { %v2167_v6 = vrot.slane %v2166_v58, 1  ;;  %v1637_v43 = vrot.slane %v1636_v53, 4 }
 0x59e   : > { %v2168_v56 = vadd.f32 %v2167_v6, %v2166_v58  ;;  %v1565_v44 = vpop.permute.xlu2 %1564  ;;  %v1638_v19 = vadd.f32 %v1637_v43, %v1636_v53  ;;  %v1650_v43 = vrot.slane %v1649_v46, 1 }
 0x59f   : > { %v1594_v28 = vmul.f32 %v4434_v15, %v1565_v44 }
 0x5a0   : > { %v2199_v10 = vsel %vm884_vm6, %v2168_v56, %v2198_v12  ;;  %v1639_v41 = vrot.slane %v1638_v19, 2  ;;  %v1651_v56 = vadd.f32 %v1650_v43, %v1649_v46 }
 0x5a1   : > { %v1652_v38 = vsel %vm601_vm0, %v1594_v28, 0.0  ;;  %v2200_v15 = vsel %vm886_vm7, %v2177_v61, %v2199_v10 }
 0x5a2   : > { %v1654_v22 = vadd.f32 %v1653_v17, %v1652_v38  ;;  %v2201_v3 = vsel %vm601_vm0, %v2200_v15, 0  ;;  %v1640_v5 = vadd.f32 %v1639_v41, %v1638_v19  ;;  %v2596_v17 = vld [vmem:[%s4604_s7] sm:$0xff] }
 0x5a3   : > { %v2223_v49 = vand.u32 4294901760, %v2201_v3  ;;  %v2625_v15 = vand.u32 4294901760, %v2596_v17 }
 0x5a4   : > { %v1655_v51 = vrot.slane %v1654_v22, 4  ;;  %v1641_v11 = vrot.slane %v1640_v5, 1 }
 0x5a5   : > { %2269 = vmatmul.f32.vlgmr.msrb.gmra.mxu3 %v2223_v49  ;;  %2359 = vmatmul.f32.vlgmr.msra.gmra.mxu0 %v2223_v49  ;;  %v2224_v48 = vsub.f32 %v2201_v3, %v2223_v49  ;;  %v2655_v3 = vsub.f32 %v2598_v39, %v2621_v9  ;;  %v2667_v40 = vsub.f32 %v2596_v17, %v2625_v15 }
 0x5a6   : > { %v1656_v31 = vadd.f32 %v1655_v51, %v1654_v22  ;;  %2384 = vmatmul.f32.vlgmr.msra.gmra.mxu1 %v2223_v49  ;;  %v1580_v8 = vpop.permute.xlu2 %1579  ;;  %2451 = vmatpush.msrb.mxu3 %v2450_v26  ;;  %v1642_v16 = vadd.f32 %v1641_v11, %v1640_v5 }
 0x5a7   : > { %v1597_v47 = vmul.f32 %v4387_v13, %v1580_v8  ;;  %v2225_v36 = vand.u32 4294901760, %v2224_v48  ;;  %v2656_v49 = vand.u32 4294901760, %v2655_v3 }
 0x5a8   : > { %v1657_v52 = vrot.slane %v1656_v31, 2  ;;  %2457 = vmatpush.msrb.mxu3 %v2456_v55  ;;  %v2399_v7 = vsel %vm880_vm4, %v1642_v16, %v4366_v45  ;;  %v2668_v55 = vand.u32 4294901760, %v2667_v40  ;;  %v3053_v16 = vld [vmem:[%s4603_s6] ss:$0 sm:$0xff] }
 0x5a9   : > { %v1662_v21 = vsel %vm601_vm0, %v1597_v47, 0.0  ;;  %v2226_v18 = vsub.f32 %v2224_v48, %v2225_v36  ;;  %v2400_v20 = vsel %vm882_vm5, %v1651_v56, %v2399_v7 }
 0x5aa   : > { %v1663_v59 = vadd.f32 %v1662_v21, %v1661_v62  ;;  %2463 = vmatpush.msrb.mxu3 %v2462_v42  ;;  %v1658_v58 = vadd.f32 %v1657_v52, %v1656_v31  ;;  %v2669_v8 = vsub.f32 %v2667_v40, %v2668_v55 }
 0x5ab   : > { %v2227_v53 = vand.u32 4294901760, %v2226_v18 }
 0x5ac   : > { %v1664_v4 = vrot.slane %v1663_v59, 4  ;;  %2469 = vmatpush.msrb.mxu3 %v2468_v24  ;;  %v1659_v6 = vrot.slane %v1658_v58, 1  ;;  %v2670_v37 = vand.u32 4294901760, %v2669_v8 }
 0x5ad   : > { %2228 = vmatmul.f32.vlgmr.msrb.gmra.mxu2 %v2227_v53  ;;  %2326 = vmatmul.f32.vlgmr.msra.gmra.mxu3 %v2225_v36 }
 0x5ae   : > { %v1665_v13 = vadd.f32 %v1664_v4, %v1663_v59  ;;  %2418 = vmatpush.msrb.mxu2 %v4468_v1  ;;  %2578 = vmatpush.msra.mxu3 %v4468_v1  ;;  %v1660_v32 = vadd.f32 %v1659_v6, %v1658_v58 }
 0x5b0   : > { %v1666_v0 = vrot.slane %v1665_v13, 2  ;;  %2420 = vmatpush.msrb.mxu2 %v4470_v27  ;;  %2580 = vmatpush.msra.mxu3 %v4470_v27  ;;  %v2401_v27 = vsel %vm884_vm6, %v1660_v32, %v2400_v20 }
 0x5b2   : > { %v1667_v61 = vadd.f32 %v1666_v0, %v1665_v13  ;;  %2422 = vmatpush.msrb.mxu2 %v4472_v54  ;;  %2582 = vmatpush.msra.mxu3 %v4472_v54 }
 0x5b4   : > { %v1668_v44 = vrot.slane %v1667_v61, 1  ;;  %2424 = vmatpush.msrb.mxu2 %v4479_v35  ;;  %2584 = vmatpush.msra.mxu3 %v4479_v35 }
 0x5b5   : > { %2299 = vmatmul.f32.vlgmr.msra.gmra.mxu2 %v2224_v48  ;;  %v2657_v48 = vsub.f32 %v2655_v3, %v2656_v49 }
 0x5b6   : > { %v1669_v1 = vadd.f32 %v1668_v44, %v1667_v61  ;;  %2547 = vmatpush.msra.mxu2 %v2448_v50 }
 0x5b7   : > { %v2658_v42 = vand.u32 4294901760, %v2657_v48 }
 0x5b8   : > { %v2402_v54 = vsel %vm886_vm7, %v1669_v1, %v2401_v27  ;;  %2551 = vmatpush.msra.mxu2 %v2454_v33  ;;  %v3054_v27 = vld [vmem:[%s4605_s8] ss:$0 sm:$0xff] }
 0x5b9   : > { %v2403_v45 = vsel %vm601_vm0, %v2402_v54, 0 }
 0x5ba   : > { %v2425_v19 = vand.u32 4294901760, %v2403_v45  ;;  %2555 = vmatpush.msra.mxu2 %v2460_v23  ;;  %v2619_v23 = vand.u32 4294901760, %v2599_v25 }
 0x5bc   : > { %2471 = vmatmul.f32.vlgmr.msrb.gmra.mxu3 %v2425_v19  ;;  %v2426_v35 = vsub.f32 %v2403_v45, %v2425_v19  ;;  %2559 = vmatpush.msra.mxu2 %v2466_v2  ;;  %v2649_v10 = vsub.f32 %v2599_v25, %v2619_v23  ;;  %v2597_v2 = vld [vmem:[%s4604_s7 + $0x8] sm:$0xff] }
 0x5bd   : > { %2720 = vmatpush.msrb.mxu3 %v2619_v23  ;;  %2620 = vmatpush.msra.mxu0 %v2619_v23  ;;  %v2623_v38 = vand.u32 4294901760, %v2597_v2 }
 0x5be   : > { %2501 = vmatmul.f32.vlgmr.msrb.gmra.mxu0 %v2426_v35  ;;  %v2427_v60 = vand.u32 4294901760, %v2426_v35  ;;  %v2650_v22 = vand.u32 4294901760, %v2649_v10 }
 0x5bf   : > { %2722 = vmatpush.msrb.mxu3 %v2621_v9  ;;  %v2661_v26 = vsub.f32 %v2597_v2, %v2623_v38  ;;  %2622 = vmatpush.msra.mxu0 %v2621_v9 }
 0x5c0   : > { %2528 = vmatmul.f32.vlgmr.msrb.gmra.mxu1 %v2427_v60  ;;  %v2428_v50 = vsub.f32 %v2426_v35, %v2427_v60  ;;  %v2651_v41 = vsub.f32 %v2649_v10, %v2650_v22 }
 0x5c1   : > { %2724 = vmatpush.msrb.mxu3 %v2623_v38  ;;  %v2662_v51 = vand.u32 4294901760, %v2661_v26  ;;  %2624 = vmatpush.msra.mxu0 %v2623_v38 }
 0x5c2   : > { %v2429_v28 = vand.u32 4294901760, %v2428_v50  ;;  %v2652_v63 = vand.u32 4294901760, %v2651_v41 }
 0x5c3   : > { %2726 = vmatpush.msrb.mxu3 %v2625_v15  ;;  %v2663_v31 = vsub.f32 %v2661_v26, %v2662_v51  ;;  %2626 = vmatpush.msra.mxu0 %v2625_v15 }
 0x5c4   : > { %2430 = vmatmul.f32.vlgmr.msrb.gmra.mxu2 %v2429_v28  ;;  %2586 = vmatmul.f32.vlgmr.msra.gmra.mxu3 %v2425_v19 }
 0x5c5   : > { %2691 = vmatpush.msrb.mxu2 %v2649_v10  ;;  %2653 = vmatpush.msra.mxu1 %v2652_v63  ;;  %v2664_v47 = vand.u32 4294901760, %v2663_v31 }
 0x5c6   : > { %2749 = vmatpush.msrb.mxu0 %v2650_v22 }
 0x5c7   : > { %2694 = vmatpush.msrb.mxu2 %v2655_v3  ;;  %2659 = vmatpush.msra.mxu1 %v2658_v42 }
 0x5c8   : > { %2753 = vmatpush.msrb.mxu0 %v2656_v49 }
 0x5c9   : > { %2697 = vmatpush.msrb.mxu2 %v2661_v26  ;;  %2665 = vmatpush.msra.mxu1 %v2664_v47 }
 0x5ca   : > { %2757 = vmatpush.msrb.mxu0 %v2662_v51 }
 0x5cb   : > { %2700 = vmatpush.msrb.mxu2 %v2667_v40  ;;  %2671 = vmatpush.msra.mxu1 %v2670_v37 }
 0x5cc   : > { %2561 = vmatmul.f32.vlgmr.msra.gmra.mxu2 %v2425_v19  ;;  %2761 = vmatpush.msrb.mxu0 %v2668_v55 }
 0x5cd   : > { %2780 = vmatpush.msrb.mxu1 %v2619_v23 }
 0x5cf   : > { %2782 = vmatpush.msrb.mxu1 %v2621_v9 }
 0x5d1   : > { %2784 = vmatpush.msrb.mxu1 %v2623_v38 }
 0x5d3   : > { %2786 = vmatpush.msrb.mxu1 %v2625_v15 }
 0x622   : > { %v2360_v5 = vpop.f32.mrf.mxu0 }
 0x623   : > { %v2385_v52 = vpop.f32.mrf.mxu1 }
 0x628   : > { %v2270_v33 = vpop.f32.mrf.mxu3 }
 0x630   : > { %v2229_v14 = vpop.f32.mrf.mxu2  ;;  %v2327_v57 = vpop.f32.mrf.mxu3 }
 0x631   : > { %v2271_v12 = vadd.f32 %v2270_v33, %v2229_v14 }
 0x638   : > { %v2300_v30 = vpop.f32.mrf.mxu2 }
 0x639   : > { %v2301_v34 = vadd.f32 %v2300_v30, %v2271_v12 }
 0x63b   : > { %v2328_v29 = vadd.f32 %v2327_v57, %v2301_v34  ;;  %v2502_v11 = vpop.f32.mrf.mxu0 }
 0x63d   : > { %v2361_v36 = vadd.f32 %v2360_v5, %v2328_v29  ;;  %v2529_v53 = vpop.f32.mrf.mxu1 }
 0x63f   : > { %v2386_v24 = vadd.f32 %v2385_v52, %v2361_v36  ;;  %v2472_v62 = vpop.f32.mrf.mxu3 }
 0x647   : > { %v2431_v21 = vpop.f32.mrf.mxu2  ;;  %v2587_v6 = vpop.f32.mrf.mxu3 }
 0x648   : > { %v2432_v18 = vadd.f32 %v2431_v21, %v2386_v24 }
 0x64a   : > { %v2473_v59 = vadd.f32 %v2472_v62, %v2432_v18 }
 0x64c   : > { %v2503_v58 = vadd.f32 %v2502_v11, %v2473_v59 }
 0x64e   : > { %v2530_v46 = vadd.f32 %v2529_v53, %v2503_v58 }
 0x64f   : > { %v2562_v4 = vpop.f32.mrf.mxu2 }
 0x650   : > { %v2563_v13 = vadd.f32 %v2562_v4, %v2530_v46 }
 0x652   : > { %v2588_v43 = vadd.f32 %v2587_v6, %v2563_v13 }
 0x654   : > { %v2594_v0 = vadd.f32 %v3053_v16, %v2588_v43 }
 0x656   : > { %v2595_v61 = vmax.f32 %v2594_v0, 0.0 }
 0x658   : > { %v2605_v7 = vsel %vm601_vm0, %v2595_v61, 0 }
 0x659   : > { %v2627_v32 = vand.u32 4294901760, %v2605_v7 }
 0x65b   : > { %2673 = vmatmul.f32.vlgmr.msra.gmra.mxu1 %v2627_v32  ;;  %v2628_v56 = vsub.f32 %v2605_v7, %v2627_v32 }
 0x65d   : > { %2703 = vmatmul.f32.vlgmr.msrb.gmra.mxu2 %v2628_v56  ;;  %v2629_v44 = vand.u32 4294901760, %v2628_v56 }
 0x65f   : > { %2730 = vmatmul.f32.vlgmr.msrb.gmra.mxu3 %v2629_v44  ;;  %v2630_v1 = vsub.f32 %v2628_v56, %v2629_v44 }
 0x661   : > { %v2631_v20 = vand.u32 4294901760, %v2630_v1 }
 0x663   : > { %2632 = vmatmul.f32.vlgmr.msra.gmra.mxu0 %v2631_v20  ;;  %2788 = vmatmul.f32.vlgmr.msrb.gmra.mxu1 %v2627_v32 }
 0x66b   : > { %2763 = vmatmul.f32.vlgmr.msrb.gmra.mxu0 %v2627_v32 }
 0x6d8   : > { %v2674_v54 = vpop.f32.mrf.mxu1 }
 0x6e0   : > { %v2633_v45 = vpop.f32.mrf.mxu0  ;;  %v2704_v60 = vpop.f32.mrf.mxu2 }
 0x6e1   : > { %v2634_v19 = vadd.f32 %v3054_v27, %v2633_v45  ;;  %v2789_v23 = vpop.f32.mrf.mxu1 }
 0x6e2   : > { %v2731_v28 = vpop.f32.mrf.mxu3 }
 0x6e3   : > { %v2675_v35 = vadd.f32 %v2674_v54, %v2634_v19 }
 0x6e5   : > { %v2705_v50 = vadd.f32 %v2704_v60, %v2675_v35 }
 0x6e7   : > { %v2732_v14 = vadd.f32 %v2731_v28, %v2705_v50 }
 0x6e8   : > { %v2764_v33 = vpop.f32.mrf.mxu0 }
 0x6e9   : > { %v2765_v25 = vadd.f32 %v2764_v33, %v2732_v14 }
 0x6eb   : > { %v2790_v39 = vadd.f32 %v2789_v23, %v2765_v25 }
 0x6ed   : > { %v2793_v12 = vsel %vm2792_vm11, %v2790_v39, -inf }
 0x6ee   : > { %2794 = vmax.xlane.f32.xlu1 %v2793_v12 }
 0x761   : > { %v2795_v30 = vpop.xlane.xlu1 %2794 }
 0x762   : > { %v2796_v10 = vsub.f32 %v2790_v39, %v2795_v30 }
 0x764   : > { %v2797_v9 = vmul.f32 1.442695, %v2796_v10 }
 0x766   : > { %3123 = vpow2.f32 %v2797_v9 }
 0x76c   : > { %v3124_v2 = vpop.eup %3123 }
 0x76d   : > { %v2799_v17 = vsel %vm2792_vm11, %v3124_v2, 0.0 }
 0x76e   : > { %2800 = vadd.xlane.f32.xlu0 %v2799_v17 }
 0x7e1   : > { %v2801_v38 = vpop.xlane.xlu0 %2800 }
 0x7e2   : > { %3125 = vlog2.f32 %v2801_v38 }
 0x7e8   : > { %v3126_v15 = vpop.eup %3125 }
 0x7e9   : > { %v2803_v34 = vmul.f32 0.6931472, %v3126_v15 }
 0x7eb   : > { %v2804_v22 = vsub.f32 %v2796_v10, %v2803_v34 }
 0x7ed   : > { %2805 = vst.msk [vmem:[%s462_s9] sm:$0xff] %vm2792_vm11, %v2804_v22 }
 0x7ee PF: > { %s4642_s12 = sld [smem:[#allocation14_spill]]  ;;  %s4645_s30 = smov %s3327_s10 }
 0x7ef   : > { %s4643_s21 = sld [smem:[#allocation13_spill]] }
 0x7f0   : > { %s4644_s11 = sld [smem:[#allocation15_spill]] }
 0x7f4   : > { %p23_p3 = scmp.ge.s32.totalorder %s4642_s12, 4  }
 0x7f5   : > { %s4646_s10 = smov %s4643_s21 }
 0x7f6   :  { %25 = sbr.rel (!%p23_p3) target bundleno = 11 (0xb), region = 128 }
 0x7fb   :  { %2825 = vsyncpa [#allocation3], 1 }
 0x7fc   :  { %2827 = vsyncpa [#allocation3 + $0x1], 1 }
 0x7fd   :  { %2828 = vsyncpa [#allocation5], 1 }
 0x7fe   :  { %2830 = vsyncpa [#allocation5 + $0x1], 1 }
 0x7ff   :  { %2831 = vsyncpa [#allocation8], 1 }

</bundles_post_ra>
